<compile_context>
chip_gen: v7x
topology: tpu7x:2x2x1
jax: 0.10.0
libtpu: 0.0.40
codegen_flags: <defaults>
</compile_context>

<pallas_src>
import functools

import numpy as np
import jax
import jax.numpy as jnp
from jax.experimental import pallas as pl
from jax.experimental.pallas import tpu as pltpu


# ---------------------------- Pallas kernel ----------------------------

def _stem_kernel(xp_ref, w_ref, b_ref, o_ref, *, H, W, Cin, Cout):
    """Fused 3x3 conv (stride 1, pad 1) + folded BN + ReLU for one image.

    xp_ref: (1, H+2, W+2, Cin)  spatially padded NHWC image (channel-padded to Cin)
    w_ref : (9, Cin, Cout)      conv weights with the BN scale folded in
    b_ref : (1, Cout)           folded BN bias
    o_ref : (1, H*W, Cout)      output rows for this image
    """
    acc = jnp.zeros((H * W, Cout), dtype=jnp.float32)
    # 3x3 conv as 9 accumulating matmuls over shifted halo windows (no im2col).
    for ky in range(3):
        for kx in range(3):
            tap = xp_ref[0, ky:ky + H, kx:kx + W, :].reshape(H * W, Cin)
            acc = acc + jnp.dot(tap, w_ref[3 * ky + kx],
                                preferred_element_type=jnp.float32)
    y = jnp.maximum(acc + b_ref[...], 0.0)          # folded BN bias + ReLU
    o_ref[0] = y.astype(o_ref.dtype)


# ---------------------------- wrapper ----------------------------

def res_stem_cifar_forward(x_nchw, w_hwio, gamma, beta, mean, var, eps=1e-5):
    """x_nchw: (N, Cin, H, W); w_hwio: (3, 3, Cin, Cout). Returns NCHW output."""
    N, Cin, H, W = x_nchw.shape
    Cout = w_hwio.shape[-1]

    # Fold eval-mode BatchNorm into the conv weights / a per-channel bias.
    scale = gamma / jnp.sqrt(var + eps)                            # (Cout,)
    bias = beta - mean * scale                                     # (Cout,)
    w_folded = (w_hwio * scale[None, None, None, :]).reshape(9, Cin, Cout)

    # Pad Cin up to a multiple of 8 (sublane-aligned contraction); zeros are inert.
    cin_p = ((Cin + 7) // 8) * 8
    w_folded = jnp.pad(w_folded, ((0, 0), (0, cin_p - Cin), (0, 0)))
    bias2d = bias[None, :]                                         # (1, Cout)

    # NCHW -> NHWC and spatial halo pad (tiny input tensor; done once in XLA).
    x_nhwc = jnp.transpose(x_nchw, (0, 2, 3, 1))
    xp = jnp.pad(x_nhwc, ((0, 0), (1, 1), (1, 1), (0, cin_p - Cin)))

    out = pl.pallas_call(
        functools.partial(_stem_kernel, H=H, W=W, Cin=cin_p, Cout=Cout),
        grid=(N,),
        out_shape=jax.ShapeDtypeStruct((N, H * W, Cout), x_nchw.dtype),
        in_specs=[
            pl.BlockSpec((1, H + 2, W + 2, cin_p), lambda n: (n, 0, 0, 0)),
            pl.BlockSpec((9, cin_p, Cout), lambda n: (0, 0, 0)),
            pl.BlockSpec((1, Cout), lambda n: (0, 0)),
        ],
        out_specs=pl.BlockSpec((1, H * W, Cout), lambda n: (n, 0, 0)),
        compiler_params=pltpu.CompilerParams(
            dimension_semantics=("parallel",)),
    )(xp, w_folded, bias2d)

    # (N, H*W, Cout) -> (N, Cout, H, W).  Small output; one cheap XLA transpose.
    return out.reshape(N, H, W, Cout).transpose(0, 3, 1, 2)


# ---------------------------- pure-JAX reference ----------------------------

def res_stem_cifar_reference(x_nchw, w_hwio, gamma, beta, mean, var, eps=1e-5):
    x = jnp.transpose(x_nchw, (0, 2, 3, 1))
    y = jax.lax.conv_general_dilated(
        x, w_hwio, window_strides=(1, 1), padding=((1, 1), (1, 1)),
        dimension_numbers=('NHWC', 'HWIO', 'NHWC'),
        precision=jax.lax.Precision.HIGHEST)
    scale = gamma / jnp.sqrt(var + eps)
    y = y * scale + (beta - mean * scale)
    y = jnp.maximum(y, 0.0)
    return jnp.transpose(y, (0, 3, 1, 2))


# ---------------------------- main ----------------------------

if __name__ == "__main__":
    key = jax.random.PRNGKey(0)
    kx, kw, kg, kb, km, kv = jax.random.split(key, 6)

    # ResStemCifar(w_in=3, w_out=16) on a small CIFAR-like input.
    N, W_IN, H, W, W_OUT = 2, 3, 16, 16, 16

    x = jax.random.normal(kx, (N, W_IN, H, W), dtype=jnp.float32)
    w = 0.1 * jax.random.normal(kw, (3, 3, W_IN, W_OUT), dtype=jnp.float32)
    gamma = 1.0 + 0.1 * jax.random.normal(kg, (W_OUT,), dtype=jnp.float32)
    beta = 0.1 * jax.random.normal(kb, (W_OUT,), dtype=jnp.float32)
    mean = 0.1 * jax.random.normal(km, (W_OUT,), dtype=jnp.float32)
    var = jax.random.uniform(kv, (W_OUT,), minval=0.5, maxval=1.5,
                             dtype=jnp.float32)

    out = jax.block_until_ready(
        res_stem_cifar_forward(x, w, gamma, beta, mean, var))
    assert out.shape == (N, W_OUT, H, W), out.shape

    ref = jax.block_until_ready(
        res_stem_cifar_reference(x, w, gamma, beta, mean, var))
    # Kernel uses the default (single-pass) MXU precision vs. an f32 HIGHEST
    # reference, so allow a slightly looser tolerance than bit-level.
    np.testing.assert_allclose(np.asarray(out), np.asarray(ref),
                               rtol=2e-2, atol=2e-2)

    print("KERNEL_OK")
</pallas_src>

<mosaic_0001>
module attributes {stable_mosaic.version = 11 : i64} {
  func.func @_stem_kernel(%arg0: i32, %arg1: memref<1x18x18x8xf32, #tpu.memory_space<vmem>>, %arg2: memref<9x8x16xf32, #tpu.memory_space<vmem>>, %arg3: memref<1x16xf32, #tpu.memory_space<vmem>>, %arg4: memref<1x256x16xf32, #tpu.memory_space<vmem>>) attributes {dimension_semantics = [#tpu.dimension_semantics<parallel>], iteration_bounds = array<i64: 2>, scalar_prefetch = 0 : i64, scratch_operands = 0 : i64, tpu.core_type = #tpu.core_type<tc>, window_params = [{transform_indices = @transform_0, window_bounds = array<i64: 1, 18, 18, 8>}, {pipeline_mode = #tpu.pipeline_mode<synchronous>, transform_indices = @transform_1, window_bounds = array<i64: 9, 8, 16>}, {pipeline_mode = #tpu.pipeline_mode<synchronous>, transform_indices = @transform_2, window_bounds = array<i64: 1, 16>}, {transform_indices = @transform_3, window_bounds = array<i64: 1, 256, 16>}]} {
    %cst = arith.constant 0.000000e+00 : f32
    %0 = vector.broadcast %cst : f32 to vector<256x16xf32>
    %c0 = arith.constant 0 : index
    %c0_0 = arith.constant 0 : index
    %c0_1 = arith.constant 0 : index
    %c0_2 = arith.constant 0 : index
    %1 = vector.load %arg1[%c0, %c0_0, %c0_1, %c0_2] : memref<1x18x18x8xf32, #tpu.memory_space<vmem>>, vector<1x16x16x8xf32>
    %2 = vector.shape_cast %1 : vector<1x16x16x8xf32> to vector<16x16x8xf32>
    %3 = vector.shape_cast %2 : vector<16x16x8xf32> to vector<256x8xf32>
    %c0_3 = arith.constant 0 : index
    %c0_4 = arith.constant 0 : index
    %c0_5 = arith.constant 0 : index
    %4 = vector.load %arg2[%c0_3, %c0_4, %c0_5] : memref<9x8x16xf32, #tpu.memory_space<vmem>>, vector<1x8x16xf32>
    %5 = vector.shape_cast %4 : vector<1x8x16xf32> to vector<8x16xf32>
    %cst_6 = arith.constant dense<0.000000e+00> : vector<256x16xf32>
    %6 = tpu.matmul %3, %5, %cst_6 {dimension_numbers = #tpu.dot_dimension_numbers<[1], [0], [0], [1], [0, 0, 1, 1], [], []>} : vector<256x8xf32>, vector<8x16xf32>, vector<256x16xf32> -> vector<256x16xf32>
    %7 = arith.addf %0, %6 : vector<256x16xf32>
    %c0_7 = arith.constant 0 : index
    %c0_8 = arith.constant 0 : index
    %c1 = arith.constant 1 : index
    %c0_9 = arith.constant 0 : index
    %8 = vector.load %arg1[%c0_7, %c0_8, %c1, %c0_9] : memref<1x18x18x8xf32, #tpu.memory_space<vmem>>, vector<1x16x16x8xf32>
    %9 = vector.shape_cast %8 : vector<1x16x16x8xf32> to vector<16x16x8xf32>
    %10 = vector.shape_cast %9 : vector<16x16x8xf32> to vector<256x8xf32>
    %c1_10 = arith.constant 1 : index
    %c0_11 = arith.constant 0 : index
    %c0_12 = arith.constant 0 : index
    %11 = vector.load %arg2[%c1_10, %c0_11, %c0_12] : memref<9x8x16xf32, #tpu.memory_space<vmem>>, vector<1x8x16xf32>
    %12 = vector.shape_cast %11 : vector<1x8x16xf32> to vector<8x16xf32>
    %cst_13 = arith.constant dense<0.000000e+00> : vector<256x16xf32>
    %13 = tpu.matmul %10, %12, %cst_13 {dimension_numbers = #tpu.dot_dimension_numbers<[1], [0], [0], [1], [0, 0, 1, 1], [], []>} : vector<256x8xf32>, vector<8x16xf32>, vector<256x16xf32> -> vector<256x16xf32>
    %14 = arith.addf %7, %13 : vector<256x16xf32>
    %c0_14 = arith.constant 0 : index
    %c0_15 = arith.constant 0 : index
    %c2 = arith.constant 2 : index
    %c0_16 = arith.constant 0 : index
    %15 = vector.load %arg1[%c0_14, %c0_15, %c2, %c0_16] : memref<1x18x18x8xf32, #tpu.memory_space<vmem>>, vector<1x16x16x8xf32>
    %16 = vector.shape_cast %15 : vector<1x16x16x8xf32> to vector<16x16x8xf32>
    %17 = vector.shape_cast %16 : vector<16x16x8xf32> to vector<256x8xf32>
    %c2_17 = arith.constant 2 : index
    %c0_18 = arith.constant 0 : index
    %c0_19 = arith.constant 0 : index
    %18 = vector.load %arg2[%c2_17, %c0_18, %c0_19] : memref<9x8x16xf32, #tpu.memory_space<vmem>>, vector<1x8x16xf32>
    %19 = vector.shape_cast %18 : vector<1x8x16xf32> to vector<8x16xf32>
    %cst_20 = arith.constant dense<0.000000e+00> : vector<256x16xf32>
    %20 = tpu.matmul %17, %19, %cst_20 {dimension_numbers = #tpu.dot_dimension_numbers<[1], [0], [0], [1], [0, 0, 1, 1], [], []>} : vector<256x8xf32>, vector<8x16xf32>, vector<256x16xf32> -> vector<256x16xf32>
    %21 = arith.addf %14, %20 : vector<256x16xf32>
    %c0_21 = arith.constant 0 : index
    %c1_22 = arith.constant 1 : index
    %c0_23 = arith.constant 0 : index
    %c0_24 = arith.constant 0 : index
    %22 = vector.load %arg1[%c0_21, %c1_22, %c0_23, %c0_24] : memref<1x18x18x8xf32, #tpu.memory_space<vmem>>, vector<1x16x16x8xf32>
    %23 = vector.shape_cast %22 : vector<1x16x16x8xf32> to vector<16x16x8xf32>
    %24 = vector.shape_cast %23 : vector<16x16x8xf32> to vector<256x8xf32>
    %c3 = arith.constant 3 : index
    %c0_25 = arith.constant 0 : index
    %c0_26 = arith.constant 0 : index
    %25 = vector.load %arg2[%c3, %c0_25, %c0_26] : memref<9x8x16xf32, #tpu.memory_space<vmem>>, vector<1x8x16xf32>
    %26 = vector.shape_cast %25 : vector<1x8x16xf32> to vector<8x16xf32>
    %cst_27 = arith.constant dense<0.000000e+00> : vector<256x16xf32>
    %27 = tpu.matmul %24, %26, %cst_27 {dimension_numbers = #tpu.dot_dimension_numbers<[1], [0], [0], [1], [0, 0, 1, 1], [], []>} : vector<256x8xf32>, vector<8x16xf32>, vector<256x16xf32> -> vector<256x16xf32>
    %28 = arith.addf %21, %27 : vector<256x16xf32>
    %c0_28 = arith.constant 0 : index
    %c1_29 = arith.constant 1 : index
    %c1_30 = arith.constant 1 : index
    %c0_31 = arith.constant 0 : index
    %29 = vector.load %arg1[%c0_28, %c1_29, %c1_30, %c0_31] : memref<1x18x18x8xf32, #tpu.memory_space<vmem>>, vector<1x16x16x8xf32>
    %30 = vector.shape_cast %29 : vector<1x16x16x8xf32> to vector<16x16x8xf32>
    %31 = vector.shape_cast %30 : vector<16x16x8xf32> to vector<256x8xf32>
    %c4 = arith.constant 4 : index
    %c0_32 = arith.constant 0 : index
    %c0_33 = arith.constant 0 : index
    %32 = vector.load %arg2[%c4, %c0_32, %c0_33] : memref<9x8x16xf32, #tpu.memory_space<vmem>>, vector<1x8x16xf32>
    %33 = vector.shape_cast %32 : vector<1x8x16xf32> to vector<8x16xf32>
    %cst_34 = arith.constant dense<0.000000e+00> : vector<256x16xf32>
    %34 = tpu.matmul %31, %33, %cst_34 {dimension_numbers = #tpu.dot_dimension_numbers<[1], [0], [0], [1], [0, 0, 1, 1], [], []>} : vector<256x8xf32>, vector<8x16xf32>, vector<256x16xf32> -> vector<256x16xf32>
    %35 = arith.addf %28, %34 : vector<256x16xf32>
    %c0_35 = arith.constant 0 : index
    %c1_36 = arith.constant 1 : index
    %c2_37 = arith.constant 2 : index
    %c0_38 = arith.constant 0 : index
    %36 = vector.load %arg1[%c0_35, %c1_36, %c2_37, %c0_38] : memref<1x18x18x8xf32, #tpu.memory_space<vmem>>, vector<1x16x16x8xf32>
    %37 = vector.shape_cast %36 : vector<1x16x16x8xf32> to vector<16x16x8xf32>
    %38 = vector.shape_cast %37 : vector<16x16x8xf32> to vector<256x8xf32>
    %c5 = arith.constant 5 : index
    %c0_39 = arith.constant 0 : index
    %c0_40 = arith.constant 0 : index
    %39 = vector.load %arg2[%c5, %c0_39, %c0_40] : memref<9x8x16xf32, #tpu.memory_space<vmem>>, vector<1x8x16xf32>
    %40 = vector.shape_cast %39 : vector<1x8x16xf32> to vector<8x16xf32>
    %cst_41 = arith.constant dense<0.000000e+00> : vector<256x16xf32>
    %41 = tpu.matmul %38, %40, %cst_41 {dimension_numbers = #tpu.dot_dimension_numbers<[1], [0], [0], [1], [0, 0, 1, 1], [], []>} : vector<256x8xf32>, vector<8x16xf32>, vector<256x16xf32> -> vector<256x16xf32>
    %42 = arith.addf %35, %41 : vector<256x16xf32>
    %c0_42 = arith.constant 0 : index
    %c2_43 = arith.constant 2 : index
    %c0_44 = arith.constant 0 : index
    %c0_45 = arith.constant 0 : index
    %43 = vector.load %arg1[%c0_42, %c2_43, %c0_44, %c0_45] : memref<1x18x18x8xf32, #tpu.memory_space<vmem>>, vector<1x16x16x8xf32>
    %44 = vector.shape_cast %43 : vector<1x16x16x8xf32> to vector<16x16x8xf32>
    %45 = vector.shape_cast %44 : vector<16x16x8xf32> to vector<256x8xf32>
    %c6 = arith.constant 6 : index
    %c0_46 = arith.constant 0 : index
    %c0_47 = arith.constant 0 : index
    %46 = vector.load %arg2[%c6, %c0_46, %c0_47] : memref<9x8x16xf32, #tpu.memory_space<vmem>>, vector<1x8x16xf32>
    %47 = vector.shape_cast %46 : vector<1x8x16xf32> to vector<8x16xf32>
    %cst_48 = arith.constant dense<0.000000e+00> : vector<256x16xf32>
    %48 = tpu.matmul %45, %47, %cst_48 {dimension_numbers = #tpu.dot_dimension_numbers<[1], [0], [0], [1], [0, 0, 1, 1], [], []>} : vector<256x8xf32>, vector<8x16xf32>, vector<256x16xf32> -> vector<256x16xf32>
    %49 = arith.addf %42, %48 : vector<256x16xf32>
    %c0_49 = arith.constant 0 : index
    %c2_50 = arith.constant 2 : index
    %c1_51 = arith.constant 1 : index
    %c0_52 = arith.constant 0 : index
    %50 = vector.load %arg1[%c0_49, %c2_50, %c1_51, %c0_52] : memref<1x18x18x8xf32, #tpu.memory_space<vmem>>, vector<1x16x16x8xf32>
    %51 = vector.shape_cast %50 : vector<1x16x16x8xf32> to vector<16x16x8xf32>
    %52 = vector.shape_cast %51 : vector<16x16x8xf32> to vector<256x8xf32>
    %c7 = arith.constant 7 : index
    %c0_53 = arith.constant 0 : index
    %c0_54 = arith.constant 0 : index
    %53 = vector.load %arg2[%c7, %c0_53, %c0_54] : memref<9x8x16xf32, #tpu.memory_space<vmem>>, vector<1x8x16xf32>
    %54 = vector.shape_cast %53 : vector<1x8x16xf32> to vector<8x16xf32>
    %cst_55 = arith.constant dense<0.000000e+00> : vector<256x16xf32>
    %55 = tpu.matmul %52, %54, %cst_55 {dimension_numbers = #tpu.dot_dimension_numbers<[1], [0], [0], [1], [0, 0, 1, 1], [], []>} : vector<256x8xf32>, vector<8x16xf32>, vector<256x16xf32> -> vector<256x16xf32>
    %56 = arith.addf %49, %55 : vector<256x16xf32>
    %c0_56 = arith.constant 0 : index
    %c2_57 = arith.constant 2 : index
    %c2_58 = arith.constant 2 : index
    %c0_59 = arith.constant 0 : index
    %57 = vector.load %arg1[%c0_56, %c2_57, %c2_58, %c0_59] : memref<1x18x18x8xf32, #tpu.memory_space<vmem>>, vector<1x16x16x8xf32>
    %58 = vector.shape_cast %57 : vector<1x16x16x8xf32> to vector<16x16x8xf32>
    %59 = vector.shape_cast %58 : vector<16x16x8xf32> to vector<256x8xf32>
    %c8 = arith.constant 8 : index
    %c0_60 = arith.constant 0 : index
    %c0_61 = arith.constant 0 : index
    %60 = vector.load %arg2[%c8, %c0_60, %c0_61] : memref<9x8x16xf32, #tpu.memory_space<vmem>>, vector<1x8x16xf32>
    %61 = vector.shape_cast %60 : vector<1x8x16xf32> to vector<8x16xf32>
    %cst_62 = arith.constant dense<0.000000e+00> : vector<256x16xf32>
    %62 = tpu.matmul %59, %61, %cst_62 {dimension_numbers = #tpu.dot_dimension_numbers<[1], [0], [0], [1], [0, 0, 1, 1], [], []>} : vector<256x8xf32>, vector<8x16xf32>, vector<256x16xf32> -> vector<256x16xf32>
    %63 = arith.addf %56, %62 : vector<256x16xf32>
    %c0_63 = arith.constant 0 : index
    %c0_64 = arith.constant 0 : index
    %64 = vector.load %arg3[%c0_63, %c0_64] : memref<1x16xf32, #tpu.memory_space<vmem>>, vector<1x16xf32>
    %65 = vector.broadcast %64 : vector<1x16xf32> to vector<256x16xf32>
    %66 = arith.addf %63, %65 : vector<256x16xf32>
    %cst_65 = arith.constant 0.000000e+00 : f32
    %67 = vector.broadcast %cst_65 : f32 to vector<256x16xf32>
    %68 = arith.maximumf %66, %67 : vector<256x16xf32>
    %c0_66 = arith.constant 0 : index
    %c0_67 = arith.constant 0 : index
    %c0_68 = arith.constant 0 : index
    %69 = vector.load %arg4[%c0_66, %c0_67, %c0_68] : memref<1x256x16xf32, #tpu.memory_space<vmem>>, vector<1x256x16xf32>
    %70 = vector.shape_cast %69 : vector<1x256x16xf32> to vector<256x16xf32>
    %71 = vector.shape_cast %68 : vector<256x16xf32> to vector<1x256x16xf32>
    tpu.vector_store %arg4[%c0_66, %c0_67, %c0_68], %71 {strides = array<i32>} : memref<1x256x16xf32, #tpu.memory_space<vmem>>, vector<1x256x16xf32>,
    return
  }
  func.func @transform_0(%arg0: i32) -> (i32, i32, i32, i32) {
    %c0_i32 = arith.constant 0 : i32
    %c0_i32_0 = arith.constant 0 : i32
    %c0_i32_1 = arith.constant 0 : i32
    %c0_i32_2 = arith.constant 0 : i32
    return %arg0, %c0_i32, %c0_i32_0, %c0_i32_1 : i32, i32, i32, i32
  }
  func.func @transform_1(%arg0: i32) -> (i32, i32, i32) {
    %c0_i32 = arith.constant 0 : i32
    %c0_i32_0 = arith.constant 0 : i32
    %c0_i32_1 = arith.constant 0 : i32
    %c0_i32_2 = arith.constant 0 : i32
    return %c0_i32, %c0_i32_0, %c0_i32_1 : i32, i32, i32
  }
  func.func @transform_2(%arg0: i32) -> (i32, i32) {
    %c0_i32 = arith.constant 0 : i32
    %c0_i32_0 = arith.constant 0 : i32
    %c0_i32_1 = arith.constant 0 : i32
    return %c0_i32, %c0_i32_0 : i32, i32
  }
  func.func @transform_3(%arg0: i32) -> (i32, i32, i32) {
    %c0_i32 = arith.constant 0 : i32
    %c0_i32_0 = arith.constant 0 : i32
    %c0_i32_1 = arith.constant 0 : i32
    return %arg0, %c0_i32, %c0_i32_0 : i32, i32, i32
  }
}

</mosaic_0001>

<bundles_post_ra>
// kernel: tpu_custom_call.1
= control target key start
LH: loop header
LB: loop body
LE: loop exit
PB: predicated region body
PF: predicated region fallthrough
CT: control target
= control target key end

     0   :  { %s5293_s12 = smov 0   ;;  %s6336_s0 = inlined_call_operand.vmem [shape: f32[2,18,18,8], index: 0, kind: input, shape index: {}]   ;;  %s6337_s1 = inlined_call_operand.vmem [shape: f32[9,8,16], index: 1, kind: input, shape index: {}]   ;;  %s6338_s2 = inlined_call_operand.vmem [shape: f32[1,16], index: 2, kind: input, shape index: {}]   ;;  %s6339_s3 = inlined_call_operand.vmem [shape: f32[2,256,16], index: 3, kind: output, shape index: {}]  }
   0x1 LB: > { %s3751_s13 = sadd.s32 4294967295, %s5271_s12   ;;  %p3755_p0 = scmp.ge.s32.totalorder %s5271_s12, 1  ;;  %s5271_s12 = sphi %s5293_s12, %s13_s12  }
   0x2   : > { %p137_p1 = scmp.lt.s32.totalorder %s5271_s12, 3 }
   0x4   : > { %p138_p2 = pnand %p3755_p0, %p137_p1 }
   0x6   : > { %141 = sbr.rel (%p138_p2) target bundleno = 525 (0x20d), region = 32 }
   0xd   : > { %v3759_v0 = vld [vmem:[%s6337_s1 + $0x8] sm:$0xff]  ;;  %v5307_v1 = vld [vmem:[%s6337_s1 + $0x20] sm:$0xff]  ;;  %p161_p3 = scmp.lt.s32.totalorder %s3751_s13, 1  ;;  %vm238_vm0 = vcmask 64512   ;;  %v4084_v9 = vld [vmem:[%s6337_s1 + $0x30] sm:$0xff]  ;;  %vm3663_vm1 = vcmask 130048  }
   0xe   : > { %v203_v2 = vld [vmem:[%s6337_s1] sm:$0xff]  ;;  %4548 = vmatprep.subr.mxu1 %v3759_v0  ;;  %4748 = vmatprep.subr.mxu0 %v5307_v1  ;;  %v4019_v3 = vld [vmem:[%s6337_s1 + $0x28] sm:$0xff]  ;;  %v5342_v10 = vld [vmem:[%s6337_s1 + $0x10] sm:$0xff] }
   0xf   : > { %4549 = vmatpush3.msra.mxu1 %v3759_v0  ;;  %4749 = vmatpush3.msra.mxu0 %v5307_v1  ;;  %s6450_s13 = smov (!%p161_p3, %s3751_s13), 1  ;;  %v5457_v28 = vld [vmem:[%s6337_s1 + $0x38] sm:$0xff] }
  0x10   : > { %4598 = vmatprep.subr.mxu1 %v203_v2  ;;  %4798 = vmatprep.subr.mxu0 %v4019_v3  ;;  %s5256_s22 = smul.u32 432, %s6450_s13  ;;  %v5618_v61 = vld [vmem:[%s6337_s1 + $0x18] sm:$0xff]  ;;  %s4250_s11 = sshll.u32 %s6450_s13, 8 }
  0x11   : > { %s6232_s16 = scalar_lea.vmem %s6339_s3, %s4250_s11 }
  0x12   : > { %s5323_s25 = scalar_lea.vmem %s6336_s0, %s5256_s22 }
  0x13   : > { %v204_v4 = vld [vmem:[%s5323_s25 + $0x1] sm:$0xff]  ;;  %v3922_v5 = vld [vmem:[%s5323_s25 + $0x19] sm:$0xff]  ;;  %v205_v6 = vld [vmem:[%s5323_s25 + $0x9] sm:$0xff] }
  0x14   : > { %4550 = vmatprep.mubr.msk.f32.mxu1 %vm238_vm0, %v204_v4  ;;  %4750 = vmatprep.mubr.msk.f32.mxu0 %vm238_vm0, %v3922_v5  ;;  %v3923_v7 = vld [vmem:[%s5323_s25 + $0x21] sm:$0xff]  ;;  %v5332_v8 = vld [vmem:[%s5323_s25 + $0x31] sm:$0xff]  ;;  %v5345_v11 = vld [vmem:[%s5323_s25 + $0x39] sm:$0xff] }
  0x15   : > { %4551 = vmatmul.mubr.msk.f32.vlgmr.msra.gmra.mrb[0].mxu1 %vm238_vm0, %v205_v6  ;;  %4751 = vmatmul.mubr.msk.f32.vlgmr.msra.gmra.mrb[0].mxu0 %vm238_vm0, %v3923_v7  ;;  %v5351_v12 = vld [vmem:[%s5323_s25 + $0x49] sm:$0xff]  ;;  %v5362_v13 = vld [vmem:[%s5323_s25 + $0x51] sm:$0xff]  ;;  %v5365_v14 = vld [vmem:[%s5323_s25 + $0x61] sm:$0xff] }
  0x16   : > { %4599 = vmatpush3.msra.mxu1 %v203_v2  ;;  %4799 = vmatpush3.msra.mxu0 %v4019_v3  ;;  %v5376_v15 = vld [vmem:[%s5323_s25 + $0x69] sm:$0xff]  ;;  %v5379_v16 = vld [vmem:[%s5323_s25 + $0x79] sm:$0xff]  ;;  %v5390_v17 = vld [vmem:[%s5323_s25 + $0x81] sm:$0xff] }
  0x17   : > { %4553 = vmatprep.mubr.msk.f32.mxu1 %vm238_vm0, %v3922_v5  ;;  %4753 = vmatprep.mubr.msk.f32.mxu0 %vm238_vm0, %v5332_v8  ;;  %v5393_v18 = vld [vmem:[%s5323_s25 + $0x91] sm:$0xff]  ;;  %v5404_v19 = vld [vmem:[%s5323_s25 + $0x99] sm:$0xff]  ;;  %v5407_v20 = vld [vmem:[%s5323_s25 + $0xa9] sm:$0xff] }
  0x18   : > { %4848 = vmatprep.subr.mxu0 %v4084_v9  ;;  %4648 = vmatprep.subr.mxu1 %v5342_v10  ;;  %v5418_v21 = vld [vmem:[%s5323_s25 + $0xb1] sm:$0xff]  ;;  %v5421_v22 = vld [vmem:[%s5323_s25 + $0xc1] sm:$0xff]  ;;  %v5432_v23 = vld [vmem:[%s5323_s25 + $0xc9] sm:$0xff] }
  0x19   : > { %4554 = vmatmul.mubr.msk.f32.gmra.mrb[2].mxu1 %vm238_vm0, %v3923_v7  ;;  %4754 = vmatmul.mubr.msk.f32.gmra.mrb[2].mxu0 %vm238_vm0, %v5345_v11  ;;  %v5435_v24 = vld [vmem:[%s5323_s25 + $0x1a] sm:$0xff]  ;;  %v5446_v25 = vld [vmem:[%s5323_s25 + $0x22] sm:$0xff]  ;;  %v5452_v27 = vld [vmem:[%s5323_s25 + $0x32] sm:$0xff] }
  0x1a   : > { %4556 = vmatprep.mubr.msk.f32.mxu1 %vm238_vm0, %v5332_v8  ;;  %4756 = vmatprep.mubr.msk.f32.mxu0 %vm238_vm0, %v5351_v12  ;;  %v5449_v26 = vld [vmem:[%s5323_s25 + $0xd9] sm:$0xff]  ;;  %v5466_v29 = vld [vmem:[%s5323_s25 + $0xe1] sm:$0xff]  ;;  %v5474_v31 = vld [vmem:[%s5323_s25 + $0xf1] sm:$0xff] }
  0x1b   : > { %6385 = vst [vmem:[#allocation2_spill] sm:$0xff] %v5466_v29  ;;  %v5469_v30 = vld [vmem:[%s5323_s25 + $0x3a] sm:$0xff]  ;;  %6386 = vst [vmem:[#allocation3_spill] sm:$0xff] %v5474_v31  ;;  %v5477_v32 = vld [vmem:[%s5323_s25 + $0x4a] sm:$0xff] }
  0x1c   : > { %v5489_v33 = vld [vmem:[%s5323_s25 + $0xf9] sm:$0xff]  ;;  %v5495_v35 = vld [vmem:[%s5323_s25 + $0x109] sm:$0xff]  ;;  %v5509_v37 = vld [vmem:[%s5323_s25 + $0x111] sm:$0xff] }
  0x1d   : > { %4557 = vmatmul.mubr.msk.f32.gmra.mrb[4].mxu1 %vm238_vm0, %v5345_v11  ;;  %4757 = vmatmul.mubr.msk.f32.gmra.mrb[4].mxu0 %vm238_vm0, %v5362_v13  ;;  %6387 = vst [vmem:[#allocation4_spill] sm:$0xff] %v5489_v33  ;;  %v5492_v34 = vld [vmem:[%s5323_s25 + $0x52] sm:$0xff]  ;;  %6388 = vst [vmem:[#allocation5_spill] sm:$0xff] %v5495_v35  ;;  %v5498_v36 = vld [vmem:[%s5323_s25 + $0x62] sm:$0xff] }
  0x1e   : > { %4559 = vmatprep.mubr.msk.f32.mxu1 %vm238_vm0, %v5351_v12  ;;  %4759 = vmatprep.mubr.msk.f32.mxu0 %vm238_vm0, %v5365_v14  ;;  %6389 = vst [vmem:[#allocation6_spill] sm:$0xff] %v5509_v37  ;;  %v5512_v38 = vld [vmem:[%s5323_s25 + $0x6a] sm:$0xff]  ;;  %v5515_v39 = vld [vmem:[%s5323_s25 + $0x121] sm:$0xff]  ;;  %v5535_v43 = vld [vmem:[%s5323_s25 + $0x139] sm:$0xff] }
  0x1f   : > { %6390 = vst [vmem:[#allocation7_spill] sm:$0xff] %v5515_v39  ;;  %v5518_v40 = vld [vmem:[%s5323_s25 + $0x7a] sm:$0xff]  ;;  %v5529_v41 = vld [vmem:[%s5323_s25 + $0x129] sm:$0xff]  ;;  %6392 = vst [vmem:[#allocation9_spill] sm:$0xff] %v5535_v43 }
  0x20   : > { %6391 = vst [vmem:[#allocation8_spill] sm:$0xff] %v5529_v41  ;;  %v5532_v42 = vld [vmem:[%s5323_s25 + $0x82] sm:$0xff]  ;;  %v5538_v44 = vld [vmem:[%s5323_s25 + $0x92] sm:$0xff]  ;;  %v5552_v46 = vld [vmem:[%s5323_s25 + $0x9a] sm:$0xff] }
  0x21   : > { %4560 = vmatmul.mubr.msk.f32.gmra.mrb[6].mxu1 %vm238_vm0, %v5362_v13  ;;  %4760 = vmatmul.mubr.msk.f32.gmra.mrb[6].mxu0 %vm238_vm0, %v5376_v15  ;;  %v5549_v45 = vld [vmem:[%s5323_s25 + $0x141] sm:$0xff]  ;;  %v5555_v47 = vld [vmem:[%s5323_s25 + $0x151] sm:$0xff]  ;;  %v5569_v49 = vld [vmem:[%s5323_s25 + $0x159] sm:$0xff] }
  0x22   : > { %4562 = vmatprep.mubr.msk.f32.mxu1 %vm238_vm0, %v5365_v14  ;;  %4762 = vmatprep.mubr.msk.f32.mxu0 %vm238_vm0, %v5379_v16  ;;  %6393 = vst [vmem:[#allocation10_spill] sm:$0xff] %v5549_v45  ;;  %6394 = vst [vmem:[#allocation11_spill] sm:$0xff] %v5555_v47  ;;  %v5558_v48 = vld [vmem:[%s5323_s25 + $0xaa] sm:$0xff]  ;;  %v5572_v50 = vld [vmem:[%s5323_s25 + $0xb2] sm:$0xff] }
  0x23   : > { %6395 = vst [vmem:[#allocation12_spill] sm:$0xff] %v5569_v49  ;;  %v5575_v51 = vld [vmem:[%s5323_s25 + $0x169] sm:$0xff]  ;;  %v5589_v53 = vld [vmem:[%s5323_s25 + $0x171] sm:$0xff]  ;;  %v171_v55 = vld [vmem:[%s5323_s25] sm:$0xff] }
  0x24   : > { %6396 = vst [vmem:[#allocation13_spill] sm:$0xff] %v5575_v51  ;;  %v5578_v52 = vld [vmem:[%s5323_s25 + $0xc2] sm:$0xff]  ;;  %6397 = vst [vmem:[#allocation14_spill] sm:$0xff] %v5589_v53  ;;  %v5592_v54 = vld [vmem:[%s5323_s25 + $0xca] sm:$0xff] }
  0x25   : > { %4563 = vmatmul.mubr.msk.f32.gmra.mrb[8].mxu1 %vm238_vm0, %v5376_v15  ;;  %4763 = vmatmul.mubr.msk.f32.gmra.mrb[8].mxu0 %vm238_vm0, %v5390_v17  ;;  %v5596_v56 = vld [vmem:[%s5323_s25 + $0xda] sm:$0xff]  ;;  %v172_v57 = vld [vmem:[%s5323_s25 + $0x8] sm:$0xff]  ;;  %v5613_v60 = vld [vmem:[%s5323_s25 + $0xf2] sm:$0xff] }
  0x26   : > { %4565 = vmatprep.mubr.msk.f32.mxu1 %vm238_vm0, %v5379_v16  ;;  %4765 = vmatprep.mubr.msk.f32.mxu0 %vm238_vm0, %v5393_v18  ;;  %v5607_v58 = vld [vmem:[%s5323_s25 + $0xe2] sm:$0xff]  ;;  %v5610_v59 = vld [vmem:[%s5323_s25 + $0x18] sm:$0xff]  ;;  %v5635_v0 = vld [vmem:[%s5323_s25 + $0x30] sm:$0xff] }
  0x27   : > { %6398 = vst [vmem:[#allocation15_spill] sm:$0xff] %v5610_v59  ;;  %v5627_v62 = vld [vmem:[%s5323_s25 + $0x20] sm:$0xff]  ;;  %6400 = vst [vmem:[#allocation17_spill] sm:$0xff] %v5635_v0  ;;  %v5638_v2 = vld [vmem:[%s5323_s25 + $0x10a] sm:$0xff] }
  0x28   : > { %6399 = vst [vmem:[#allocation16_spill] sm:$0xff] %v5627_v62  ;;  %v5630_v63 = vld [vmem:[%s5323_s25 + $0xfa] sm:$0xff]  ;;  %v5653_v4 = vld [vmem:[%s5323_s25 + $0x112] sm:$0xff]  ;;  %v5656_v5 = vld [vmem:[%s5323_s25 + $0x48] sm:$0xff] }
  0x29   : > { %4566 = vmatmul.mubr.msk.f32.gmra.mrb[10].mxu1 %vm238_vm0, %v5390_v17  ;;  %4766 = vmatmul.mubr.msk.f32.gmra.mrb[10].mxu0 %vm238_vm0, %v5404_v19  ;;  %v5650_v3 = vld [vmem:[%s5323_s25 + $0x38] sm:$0xff]  ;;  %6402 = vst [vmem:[#allocation19_spill] sm:$0xff] %v5656_v5  ;;  %v5659_v6 = vld [vmem:[%s5323_s25 + $0x122] sm:$0xff]  ;;  %v5670_v7 = vld [vmem:[%s5323_s25 + $0x50] sm:$0xff] }
  0x2a   : > { %4568 = vmatprep.mubr.msk.f32.mxu1 %vm238_vm0, %v5393_v18  ;;  %4768 = vmatprep.mubr.msk.f32.mxu0 %vm238_vm0, %v5407_v20  ;;  %6401 = vst [vmem:[#allocation18_spill] sm:$0xff] %v5650_v3  ;;  %6403 = vst [vmem:[#allocation20_spill] sm:$0xff] %v5670_v7 }
  0x2d   : > { %4569 = vmatmul.mubr.msk.f32.gmra.mrb[12].mxu1 %vm238_vm0, %v5404_v19  ;;  %4769 = vmatmul.mubr.msk.f32.gmra.mrb[12].mxu0 %vm238_vm0, %v5418_v21 }
  0x2e   : > { %4571 = vmatprep.mubr.msk.f32.mxu1 %vm238_vm0, %v5407_v20  ;;  %4771 = vmatprep.mubr.msk.f32.mxu0 %vm238_vm0, %v5421_v22 }
  0x31   : > { %4572 = vmatmul.mubr.msk.f32.gmra.mrb[14].mxu1 %vm238_vm0, %v5418_v21  ;;  %4772 = vmatmul.mubr.msk.f32.gmra.mrb[14].mxu0 %vm238_vm0, %v5432_v23 }
  0x32   : > { %4574 = vmatprep.mubr.msk.f32.mxu1 %vm238_vm0, %v5421_v22  ;;  %4800 = vmatprep.mubr.msk.f32.mxu0 %vm238_vm0, %v5435_v24 }
  0x35   : > { %4575 = vmatmul.mubr.msk.f32.gmra.mrb[16].mxu1 %vm238_vm0, %v5432_v23  ;;  %4801 = vmatmul.mubr.msk.f32.vlgmr.msra.gmra.mrb[0].mxu0 %vm238_vm0, %v5446_v25 }
  0x36   : > { %4849 = vmatpush3.msra.mxu0 %v4084_v9  ;;  %4577 = vmatprep.mubr.msk.f32.mxu1 %vm238_vm0, %v5449_v26  ;;  %v5673_v9 = vld [vmem:[%s5323_s25 + $0x12a] sm:$0xff] }
  0x37   : > { %4803 = vmatprep.mubr.msk.f32.mxu0 %vm238_vm0, %v5452_v27  ;;  %4898 = vmatprep.subr.mxu0 %v5457_v28 }
  0x39   : > { %4578 = vmatmul.mubr.msk.f32.gmra.mrb[18].mxu1 %vm238_vm0, %v5466_v29  ;;  %4804 = vmatmul.mubr.msk.f32.gmra.mrb[2].mxu0 %vm238_vm0, %v5469_v30  ;;  %v5770_v29 = vld [vmem:[%s5323_s25 + $0xd8] sm:$0xff] }
  0x3a   : > { %4580 = vmatprep.mubr.msk.f32.mxu1 %vm238_vm0, %v5474_v31  ;;  %4806 = vmatprep.mubr.msk.f32.mxu0 %vm238_vm0, %v5477_v32  ;;  %v5753_v31 = vld [vmem:[%s5323_s25 + $0x18a] sm:$0xff] }
  0x3b   : > { %6414 = vst [vmem:[#allocation31_spill] sm:$0xff] %v5753_v31 }
  0x3d   : > { %4581 = vmatmul.mubr.msk.f32.gmra.mrb[20].mxu1 %vm238_vm0, %v5489_v33  ;;  %4807 = vmatmul.mubr.msk.f32.gmra.mrb[4].mxu0 %vm238_vm0, %v5492_v34  ;;  %v5739_v33 = vld [vmem:[%s5323_s25 + $0x182] sm:$0xff] }
  0x3e   : > { %4583 = vmatprep.mubr.msk.f32.mxu1 %vm238_vm0, %v5495_v35  ;;  %4809 = vmatprep.mubr.msk.f32.mxu0 %vm238_vm0, %v5498_v36  ;;  %v5736_v35 = vld [vmem:[%s5323_s25 + $0xa8] sm:$0xff]  ;;  %6412 = vst [vmem:[#allocation29_spill] sm:$0xff] %v5739_v33 }
  0x3f   : > { %6411 = vst [vmem:[#allocation28_spill] sm:$0xff] %v5736_v35 }
  0x41   : > { %4584 = vmatmul.mubr.msk.f32.gmra.mrb[22].mxu1 %vm238_vm0, %v5509_v37  ;;  %4810 = vmatmul.mubr.msk.f32.gmra.mrb[6].mxu0 %vm238_vm0, %v5512_v38  ;;  %v5733_v37 = vld [vmem:[%s5323_s25 + $0x172] sm:$0xff] }
  0x42   : > { %4586 = vmatprep.mubr.msk.f32.mxu1 %vm238_vm0, %v5515_v39  ;;  %4812 = vmatprep.mubr.msk.f32.mxu0 %vm238_vm0, %v5518_v40  ;;  %v5730_v39 = vld [vmem:[%s5323_s25 + $0x98] sm:$0xff]  ;;  %6410 = vst [vmem:[#allocation27_spill] sm:$0xff] %v5733_v37 }
  0x43   : > { %6409 = vst [vmem:[#allocation26_spill] sm:$0xff] %v5730_v39 }
  0x45   : > { %4587 = vmatmul.mubr.msk.f32.gmra.mrb[24].mxu1 %vm238_vm0, %v5529_v41  ;;  %4813 = vmatmul.mubr.msk.f32.gmra.mrb[8].mxu0 %vm238_vm0, %v5532_v42  ;;  %v5719_v41 = vld [vmem:[%s5323_s25 + $0x16a] sm:$0xff] }
  0x46   : > { %4589 = vmatprep.mubr.msk.f32.mxu1 %vm238_vm0, %v5535_v43  ;;  %4815 = vmatprep.mubr.msk.f32.mxu0 %vm238_vm0, %v5538_v44  ;;  %v5716_v43 = vld [vmem:[%s5323_s25 + $0x90] sm:$0xff] }
  0x47   : > { %6408 = vst [vmem:[#allocation25_spill] sm:$0xff] %v5716_v43 }
  0x49   : > { %4590 = vmatmul.mubr.msk.f32.gmra.mrb[26].mxu1 %vm238_vm0, %v5549_v45  ;;  %4816 = vmatmul.mubr.msk.f32.gmra.mrb[10].mxu0 %vm238_vm0, %v5552_v46  ;;  %v5713_v45 = vld [vmem:[%s5323_s25 + $0x15a] sm:$0xff] }
  0x4a   : > { %4592 = vmatprep.mubr.msk.f32.mxu1 %vm238_vm0, %v5555_v47  ;;  %4818 = vmatprep.mubr.msk.f32.mxu0 %vm238_vm0, %v5558_v48  ;;  %v5710_v47 = vld [vmem:[%s5323_s25 + $0x80] sm:$0xff] }
  0x4b   : > { %6407 = vst [vmem:[#allocation24_spill] sm:$0xff] %v5710_v47 }
  0x4d   : > { %4593 = vmatmul.mubr.msk.f32.gmra.mrb[28].mxu1 %vm238_vm0, %v5569_v49  ;;  %4819 = vmatmul.mubr.msk.f32.gmra.mrb[12].mxu0 %vm238_vm0, %v5572_v50  ;;  %v5699_v49 = vld [vmem:[%s5323_s25 + $0x152] sm:$0xff] }
  0x4e   : > { %4595 = vmatprep.mubr.msk.f32.mxu1 %vm238_vm0, %v5575_v51  ;;  %4821 = vmatprep.mubr.msk.f32.mxu0 %vm238_vm0, %v5578_v52  ;;  %v5696_v51 = vld [vmem:[%s5323_s25 + $0x78] sm:$0xff] }
  0x4f   : > { %6406 = vst [vmem:[#allocation23_spill] sm:$0xff] %v5696_v51 }
  0x51   : > { %4596 = vmatmul.mubr.msk.f32.gmra.mrb[30].mxu1 %vm238_vm0, %v5589_v53  ;;  %4822 = vmatmul.mubr.msk.f32.gmra.mrb[14].mxu0 %vm238_vm0, %v5592_v54  ;;  %v5693_v53 = vld [vmem:[%s5323_s25 + $0x142] sm:$0xff] }
  0x52   : > { %4600 = vmatprep.mubr.msk.f32.mxu1 %vm238_vm0, %v171_v55  ;;  %4824 = vmatprep.mubr.msk.f32.mxu0 %vm238_vm0, %v5596_v56  ;;  %v5679_v55 = vld [vmem:[%s5323_s25 + $0x13a] sm:$0xff] }
  0x55   : > { %4601 = vmatmul.mubr.msk.f32.vlgmr.msra.gmra.mrb[0].mxu1 %vm238_vm0, %v172_v57  ;;  %4825 = vmatmul.mubr.msk.f32.gmra.mrb[16].mxu0 %vm238_vm0, %v5607_v58  ;;  %v5690_v57 = vld [vmem:[%s5323_s25 + $0x68] sm:$0xff] }
  0x56   : > { %4649 = vmatpush3.msra.mxu1 %v5342_v10  ;;  %4603 = vmatprep.mubr.msk.f32.mxu1 %vm238_vm0, %v5610_v59  ;;  %v5676_v10 = vld [vmem:[%s5323_s25 + $0x60] sm:$0xff]  ;;  %6405 = vst [vmem:[#allocation22_spill] sm:$0xff] %v5690_v57 }
  0x57   : > { %4827 = vmatprep.mubr.msk.f32.mxu0 %vm238_vm0, %v5613_v60  ;;  %4698 = vmatprep.subr.mxu1 %v5618_v61  ;;  %6404 = vst [vmem:[#allocation21_spill] sm:$0xff] %v5676_v10  ;;  %v5756_v59 = vld [vmem:[%s5323_s25 + $0xc0] sm:$0xff] }
  0x59   : > { %4604 = vmatmul.mubr.msk.f32.gmra.mrb[2].mxu1 %vm238_vm0, %v5627_v62  ;;  %4828 = vmatmul.mubr.msk.f32.gmra.mrb[18].mxu0 %vm238_vm0, %v5630_v63  ;;  %v5750_v62 = vld [vmem:[%s5323_s25 + $0xb0] sm:$0xff] }
  0x5a   : > { %4606 = vmatprep.mubr.msk.f32.mxu1 %vm238_vm0, %v5635_v0  ;;  %4830 = vmatprep.mubr.msk.f32.mxu0 %vm238_vm0, %v5638_v2  ;;  %6413 = vst [vmem:[#allocation30_spill] sm:$0xff] %v5750_v62 }
  0x5d   : > { %4607 = vmatmul.mubr.msk.f32.gmra.mrb[4].mxu1 %vm238_vm0, %v5650_v3  ;;  %4831 = vmatmul.mubr.msk.f32.gmra.mrb[20].mxu0 %vm238_vm0, %v5653_v4 }
  0x5e   : > { %4609 = vmatprep.mubr.msk.f32.mxu1 %vm238_vm0, %v5656_v5  ;;  %4833 = vmatprep.mubr.msk.f32.mxu0 %vm238_vm0, %v5659_v6 }
  0x61   : > { %4610 = vmatmul.mubr.msk.f32.gmra.mrb[6].mxu1 %vm238_vm0, %v5670_v7  ;;  %4834 = vmatmul.mubr.msk.f32.gmra.mrb[22].mxu0 %vm238_vm0, %v5673_v9 }
  0x62   : > { %4612 = vmatprep.mubr.msk.f32.mxu1 %vm238_vm0, %v5676_v10  ;;  %4836 = vmatprep.mubr.msk.f32.mxu0 %vm238_vm0, %v5679_v55 }
  0x65   : > { %4613 = vmatmul.mubr.msk.f32.gmra.mrb[8].mxu1 %vm238_vm0, %v5690_v57  ;;  %4837 = vmatmul.mubr.msk.f32.gmra.mrb[24].mxu0 %vm238_vm0, %v5693_v53 }
  0x66   : > { %4615 = vmatprep.mubr.msk.f32.mxu1 %vm238_vm0, %v5696_v51  ;;  %4839 = vmatprep.mubr.msk.f32.mxu0 %vm238_vm0, %v5699_v49 }
  0x69   : > { %4616 = vmatmul.mubr.msk.f32.gmra.mrb[10].mxu1 %vm238_vm0, %v5710_v47  ;;  %4840 = vmatmul.mubr.msk.f32.gmra.mrb[26].mxu0 %vm238_vm0, %v5713_v45 }
  0x6a   : > { %4618 = vmatprep.mubr.msk.f32.mxu1 %vm238_vm0, %v5716_v43  ;;  %4842 = vmatprep.mubr.msk.f32.mxu0 %vm238_vm0, %v5719_v41 }
  0x6d   : > { %4619 = vmatmul.mubr.msk.f32.gmra.mrb[12].mxu1 %vm238_vm0, %v5730_v39  ;;  %4843 = vmatmul.mubr.msk.f32.gmra.mrb[28].mxu0 %vm238_vm0, %v5733_v37  ;;  %v5775_v37 = vld [vmem:[%s6337_s1 + $0x40] sm:$0xff] }
  0x6e   : > { %4621 = vmatprep.mubr.msk.f32.mxu1 %vm238_vm0, %v5736_v35  ;;  %4845 = vmatprep.mubr.msk.f32.mxu0 %vm238_vm0, %v5739_v33  ;;  %v5767_v33 = vld [vmem:[%s5323_s25 + $0xc8] sm:$0xff] }
  0x6f   : > { %6415 = vst [vmem:[#allocation32_spill] sm:$0xff] %v5767_v33 }
  0x71   : > { %4622 = vmatmul.mubr.msk.f32.gmra.mrb[14].mxu1 %vm238_vm0, %v5750_v62  ;;  %4846 = vmatmul.mubr.msk.f32.gmra.mrb[30].mxu0 %vm238_vm0, %v5753_v31  ;;  %v5785_v31 = vld [vmem:[%s5323_s25 + $0xe0] sm:$0xff] }
  0x72   : > { %4624 = vmatprep.mubr.msk.f32.mxu1 %vm238_vm0, %v5756_v59  ;;  %4850 = vmatprep.mubr.msk.f32.mxu0 %vm238_vm0, %v5635_v0  ;;  %v5790_v0 = vld [vmem:[%s5323_s25 + $0xf0] sm:$0xff] }
  0x75   : > { %4625 = vmatmul.mubr.msk.f32.gmra.mrb[16].mxu1 %vm238_vm0, %v5767_v33  ;;  %4851 = vmatmul.mubr.msk.f32.vlgmr.msra.gmra.mrb[0].mxu0 %vm238_vm0, %v5650_v3  ;;  %v881_v3 = vld [vmem:[%s5323_s25 + $0x2] sm:$0xff] }
  0x76   : > { %4899 = vmatpush3.msra.mxu0 %v5457_v28  ;;  %4627 = vmatprep.mubr.msk.f32.mxu1 %vm238_vm0, %v5770_v29  ;;  %v5802_v28 = vld [vmem:[%s5323_s25 + $0xf8] sm:$0xff] }
  0x77   : > { %4853 = vmatprep.mubr.msk.f32.mxu0 %vm238_vm0, %v5656_v5  ;;  %4948 = vmatprep.subr.mxu0 %v5775_v37  ;;  %v5805_v5 = vld [vmem:[%s5323_s25 + $0x108] sm:$0xff] }
  0x79   : > { %4628 = vmatmul.mubr.msk.f32.gmra.mrb[18].mxu1 %vm238_vm0, %v5785_v31  ;;  %4854 = vmatmul.mubr.msk.f32.gmra.mrb[2].mxu0 %vm238_vm0, %v5670_v7  ;;  %v5816_v7 = vld [vmem:[%s5323_s25 + $0x110] sm:$0xff] }
  0x7a   : > { %4630 = vmatprep.mubr.msk.f32.mxu1 %vm238_vm0, %v5790_v0  ;;  %4856 = vmatprep.mubr.msk.f32.mxu0 %vm238_vm0, %v5676_v10  ;;  %v5819_v10 = vld [vmem:[%s5323_s25 + $0x120] sm:$0xff] }
  0x7d   : > { %4631 = vmatmul.mubr.msk.f32.gmra.mrb[20].mxu1 %vm238_vm0, %v5802_v28  ;;  %4857 = vmatmul.mubr.msk.f32.gmra.mrb[4].mxu0 %vm238_vm0, %v5690_v57  ;;  %v5830_v57 = vld [vmem:[%s5323_s25 + $0x128] sm:$0xff] }
  0x7e   : > { %4633 = vmatprep.mubr.msk.f32.mxu1 %vm238_vm0, %v5805_v5  ;;  %4859 = vmatprep.mubr.msk.f32.mxu0 %vm238_vm0, %v5696_v51  ;;  %v5833_v51 = vld [vmem:[%s5323_s25 + $0x138] sm:$0xff] }
  0x81   : > { %4634 = vmatmul.mubr.msk.f32.gmra.mrb[22].mxu1 %vm238_vm0, %v5816_v7  ;;  %4860 = vmatmul.mubr.msk.f32.gmra.mrb[6].mxu0 %vm238_vm0, %v5710_v47  ;;  %v5844_v47 = vld [vmem:[%s5323_s25 + $0x140] sm:$0xff] }
  0x82   : > { %4636 = vmatprep.mubr.msk.f32.mxu1 %vm238_vm0, %v5819_v10  ;;  %4862 = vmatprep.mubr.msk.f32.mxu0 %vm238_vm0, %v5716_v43  ;;  %v5847_v43 = vld [vmem:[%s5323_s25 + $0x150] sm:$0xff] }
  0x85   : > { %4637 = vmatmul.mubr.msk.f32.gmra.mrb[24].mxu1 %vm238_vm0, %v5830_v57  ;;  %4863 = vmatmul.mubr.msk.f32.gmra.mrb[8].mxu0 %vm238_vm0, %v5730_v39  ;;  %v5858_v39 = vld [vmem:[%s5323_s25 + $0x158] sm:$0xff] }
  0x86   : > { %4639 = vmatprep.mubr.msk.f32.mxu1 %vm238_vm0, %v5833_v51  ;;  %4865 = vmatprep.mubr.msk.f32.mxu0 %vm238_vm0, %v5736_v35  ;;  %v5861_v35 = vld [vmem:[%s5323_s25 + $0x168] sm:$0xff] }
  0x89   : > { %4640 = vmatmul.mubr.msk.f32.gmra.mrb[26].mxu1 %vm238_vm0, %v5844_v47  ;;  %4866 = vmatmul.mubr.msk.f32.gmra.mrb[10].mxu0 %vm238_vm0, %v5750_v62  ;;  %v5872_v62 = vld [vmem:[%s5323_s25 + $0x170] sm:$0xff] }
  0x8a   : > { %4642 = vmatprep.mubr.msk.f32.mxu1 %vm238_vm0, %v5847_v43  ;;  %4868 = vmatprep.mubr.msk.f32.mxu0 %vm238_vm0, %v5756_v59 }
  0x8d   : > { %4643 = vmatmul.mubr.msk.f32.gmra.mrb[28].mxu1 %vm238_vm0, %v5858_v39  ;;  %4869 = vmatmul.mubr.msk.f32.gmra.mrb[12].mxu0 %vm238_vm0, %v5767_v33  ;;  %v882_v33 = vld [vmem:[%s5323_s25 + $0xa] sm:$0xff] }
  0x8e   : > { %4645 = vmatprep.mubr.msk.f32.mxu1 %vm238_vm0, %v5861_v35  ;;  %4871 = vmatprep.mubr.msk.f32.mxu0 %vm238_vm0, %v5770_v29 }
  0x91   : > { %4646 = vmatmul.mubr.msk.f32.gmra.mrb[30].mxu1 %vm238_vm0, %v5872_v62  ;;  %4872 = vmatmul.mubr.msk.f32.gmra.mrb[14].mxu0 %vm238_vm0, %v5785_v31 }
  0x92   : > { %4650 = vmatprep.mubr.msk.f32.mxu1 %vm238_vm0, %v881_v3  ;;  %4874 = vmatprep.mubr.msk.f32.mxu0 %vm238_vm0, %v5790_v0  ;;  %v6432_v3 = vld [vmem:[#allocation22_spill] sm:$0xff] }
  0x95   : > { %4651 = vmatmul.mubr.msk.f32.vlgmr.msra.gmra.mrb[0].mxu1 %vm238_vm0, %v882_v33  ;;  %4875 = vmatmul.mubr.msk.f32.gmra.mrb[16].mxu0 %vm238_vm0, %v5802_v28  ;;  %v4082_v33 = vld [vmem:[%s5323_s25 + $0x198] sm:$0xff] }
  0x96   : > { %4699 = vmatpush3.msra.mxu1 %v5618_v61  ;;  %4653 = vmatprep.mubr.msk.f32.mxu1 %vm238_vm0, %v5435_v24  ;;  %v5925_v24 = vld [vmem:[%s5323_s25 + $0x180] sm:$0xff] }
  0x97   : > { %4877 = vmatprep.mubr.msk.f32.mxu0 %vm238_vm0, %v5805_v5  ;;  %4998 = vmatprep.subr.mxu1 %v5307_v1  ;;  %v4083_v61 = vld [vmem:[%s5323_s25 + $0x1a0] sm:$0xff] }
  0x99   : > { %4654 = vmatmul.mubr.msk.f32.gmra.mrb[2].mxu1 %vm238_vm0, %v5446_v25  ;;  %4878 = vmatmul.mubr.msk.f32.gmra.mrb[18].mxu0 %vm238_vm0, %v5816_v7  ;;  %v5936_v25 = vld [vmem:[%s5323_s25 + $0x188] sm:$0xff] }
  0x9a   : > { %4656 = vmatprep.mubr.msk.f32.mxu1 %vm238_vm0, %v5452_v27  ;;  %4880 = vmatprep.mubr.msk.f32.mxu0 %vm238_vm0, %v5819_v10 }
  0x9d   : > { %4657 = vmatmul.mubr.msk.f32.gmra.mrb[4].mxu1 %vm238_vm0, %v5469_v30  ;;  %4881 = vmatmul.mubr.msk.f32.gmra.mrb[20].mxu0 %vm238_vm0, %v5830_v57 }
  0x9e   : > { %4659 = vmatprep.mubr.msk.f32.mxu1 %vm238_vm0, %v5477_v32  ;;  %4883 = vmatprep.mubr.msk.f32.mxu0 %vm238_vm0, %v5833_v51 }
  0xa1   : > { %4660 = vmatmul.mubr.msk.f32.gmra.mrb[6].mxu1 %vm238_vm0, %v5492_v34  ;;  %4884 = vmatmul.mubr.msk.f32.gmra.mrb[22].mxu0 %vm238_vm0, %v5844_v47 }
  0xa2   : > { %4662 = vmatprep.mubr.msk.f32.mxu1 %vm238_vm0, %v5498_v36  ;;  %4886 = vmatprep.mubr.msk.f32.mxu0 %vm238_vm0, %v5847_v43 }
  0xa5   : > { %4663 = vmatmul.mubr.msk.f32.gmra.mrb[8].mxu1 %vm238_vm0, %v5512_v38  ;;  %4887 = vmatmul.mubr.msk.f32.gmra.mrb[24].mxu0 %vm238_vm0, %v5858_v39 }
  0xa6   : > { %4665 = vmatprep.mubr.msk.f32.mxu1 %vm238_vm0, %v5518_v40  ;;  %4889 = vmatprep.mubr.msk.f32.mxu0 %vm238_vm0, %v5861_v35 }
  0xa9   : > { %4666 = vmatmul.mubr.msk.f32.gmra.mrb[10].mxu1 %vm238_vm0, %v5532_v42  ;;  %4890 = vmatmul.mubr.msk.f32.gmra.mrb[26].mxu0 %vm238_vm0, %v5872_v62 }
  0xaa   : > { %4668 = vmatprep.mubr.msk.f32.mxu1 %vm238_vm0, %v5538_v44  ;;  %4892 = vmatprep.mubr.msk.f32.mxu0 %vm238_vm0, %v5925_v24 }
  0xad   : > { %4669 = vmatmul.mubr.msk.f32.gmra.mrb[12].mxu1 %vm238_vm0, %v5552_v46  ;;  %4893 = vmatmul.mubr.msk.f32.gmra.mrb[28].mxu0 %vm238_vm0, %v5936_v25 }
  0xae   : > { %4671 = vmatprep.mubr.msk.f32.mxu1 %vm238_vm0, %v5558_v48  ;;  %4895 = vmatprep.mubr.msk.f32.mxu0 %vm238_vm0, %v4082_v33  ;;  %v6433_v33 = vld [vmem:[#allocation10_spill] sm:$0xff] }
  0xb1   : > { %4672 = vmatmul.mubr.msk.f32.gmra.mrb[14].mxu1 %vm238_vm0, %v5572_v50  ;;  %4896 = vmatmul.mubr.msk.f32.gmra.mrb[30].mxu0 %vm238_vm0, %v4083_v61  ;;  %v6434_v61 = vld [vmem:[#allocation23_spill] sm:$0xff] }
  0xb2   : > { %4674 = vmatprep.mubr.msk.f32.mxu1 %vm238_vm0, %v5578_v52  ;;  %4900 = vmatprep.mubr.msk.f32.mxu0 %vm238_vm0, %v5332_v8  ;;  %v6416_v8 = vld [vmem:[#allocation27_spill] sm:$0xff] }
  0xb5   : > { %4675 = vmatmul.mubr.msk.f32.gmra.mrb[16].mxu1 %vm238_vm0, %v5592_v54  ;;  %4901 = vmatmul.mubr.msk.f32.vlgmr.msra.gmra.mrb[0].mxu0 %vm238_vm0, %v5345_v11  ;;  %v6417_v11 = vld [vmem:[#allocation2_spill] sm:$0xff] }
  0xb6   : > { %4949 = vmatpush3.msra.mxu0 %v5775_v37  ;;  %4677 = vmatprep.mubr.msk.f32.mxu1 %vm238_vm0, %v5596_v56  ;;  %v6431_v37 = vld [vmem:[#allocation9_spill] sm:$0xff] }
  0xb7   : > { %4903 = vmatprep.mubr.msk.f32.mxu0 %vm238_vm0, %v5351_v12  ;;  %v6418_v12 = vld [vmem:[#allocation15_spill] sm:$0xff] }
  0xb9   : > { %4678 = vmatmul.mubr.msk.f32.gmra.mrb[18].mxu1 %vm238_vm0, %v5607_v58  ;;  %4904 = vmatmul.mubr.msk.f32.gmra.mrb[2].mxu0 %vm238_vm0, %v5362_v13  ;;  %v6419_v13 = vld [vmem:[#allocation3_spill] sm:$0xff] }
  0xba   : > { %4680 = vmatprep.mubr.msk.f32.mxu1 %vm238_vm0, %v5613_v60  ;;  %4906 = vmatprep.mubr.msk.f32.mxu0 %vm238_vm0, %v5365_v14  ;;  %v6420_v14 = vld [vmem:[#allocation16_spill] sm:$0xff] }
  0xbd   : > { %4681 = vmatmul.mubr.msk.f32.gmra.mrb[20].mxu1 %vm238_vm0, %v5630_v63  ;;  %4907 = vmatmul.mubr.msk.f32.gmra.mrb[4].mxu0 %vm238_vm0, %v5376_v15  ;;  %v6421_v15 = vld [vmem:[#allocation4_spill] sm:$0xff] }
  0xbe   : > { %4683 = vmatprep.mubr.msk.f32.mxu1 %vm238_vm0, %v5638_v2  ;;  %4909 = vmatprep.mubr.msk.f32.mxu0 %vm238_vm0, %v5379_v16  ;;  %v6422_v16 = vld [vmem:[#allocation17_spill] sm:$0xff] }
  0xc1   : > { %4684 = vmatmul.mubr.msk.f32.gmra.mrb[22].mxu1 %vm238_vm0, %v5653_v4  ;;  %4910 = vmatmul.mubr.msk.f32.gmra.mrb[6].mxu0 %vm238_vm0, %v5390_v17  ;;  %v6423_v17 = vld [vmem:[#allocation5_spill] sm:$0xff] }
  0xc2   : > { %4686 = vmatprep.mubr.msk.f32.mxu1 %vm238_vm0, %v5659_v6  ;;  %4912 = vmatprep.mubr.msk.f32.mxu0 %vm238_vm0, %v5393_v18  ;;  %v6424_v18 = vld [vmem:[#allocation18_spill] sm:$0xff] }
  0xc5   : > { %4687 = vmatmul.mubr.msk.f32.gmra.mrb[24].mxu1 %vm238_vm0, %v5673_v9  ;;  %4913 = vmatmul.mubr.msk.f32.gmra.mrb[8].mxu0 %vm238_vm0, %v5404_v19  ;;  %v6425_v19 = vld [vmem:[#allocation6_spill] sm:$0xff] }
  0xc6   : > { %4689 = vmatprep.mubr.msk.f32.mxu1 %vm238_vm0, %v5679_v55  ;;  %4915 = vmatprep.mubr.msk.f32.mxu0 %vm238_vm0, %v5407_v20  ;;  %v6426_v20 = vld [vmem:[#allocation19_spill] sm:$0xff] }
  0xc9   : > { %4690 = vmatmul.mubr.msk.f32.gmra.mrb[26].mxu1 %vm238_vm0, %v5693_v53  ;;  %4916 = vmatmul.mubr.msk.f32.gmra.mrb[10].mxu0 %vm238_vm0, %v5418_v21  ;;  %v6427_v21 = vld [vmem:[#allocation7_spill] sm:$0xff] }
  0xca   : > { %4692 = vmatprep.mubr.msk.f32.mxu1 %vm238_vm0, %v5699_v49  ;;  %4918 = vmatprep.mubr.msk.f32.mxu0 %vm238_vm0, %v5421_v22  ;;  %v6429_v22 = vld [vmem:[#allocation8_spill] sm:$0xff] }
  0xcd   : > { %4693 = vmatmul.mubr.msk.f32.gmra.mrb[28].mxu1 %vm238_vm0, %v5713_v45  ;;  %4919 = vmatmul.mubr.msk.f32.gmra.mrb[12].mxu0 %vm238_vm0, %v5432_v23  ;;  %v6430_v23 = vld [vmem:[#allocation21_spill] sm:$0xff] }
  0xce   : > { %4695 = vmatprep.mubr.msk.f32.mxu1 %vm238_vm0, %v5719_v41  ;;  %4921 = vmatprep.mubr.msk.f32.mxu0 %vm238_vm0, %v5449_v26 }
  0xd1   : > { %4696 = vmatmul.mubr.msk.f32.gmra.mrb[30].mxu1 %vm238_vm0, %v6416_v8  ;;  %4922 = vmatmul.mubr.msk.f32.gmra.mrb[14].mxu0 %vm238_vm0, %v6417_v11  ;;  %v6443_v8 = vld [vmem:[#allocation30_spill] sm:$0xff] }
  0xd2   : > { %4700 = vmatprep.mubr.msk.f32.mxu1 %vm238_vm0, %v6418_v12  ;;  %4924 = vmatprep.mubr.msk.f32.mxu0 %vm238_vm0, %v6419_v13  ;;  %v6435_v12 = vld [vmem:[#allocation11_spill] sm:$0xff] }
  0xd5   : > { %4701 = vmatmul.mubr.msk.f32.vlgmr.msra.gmra.mrb[0].mxu1 %vm238_vm0, %v6420_v14  ;;  %4925 = vmatmul.mubr.msk.f32.gmra.mrb[16].mxu0 %vm238_vm0, %v6421_v15  ;;  %v6436_v14 = vld [vmem:[#allocation24_spill] sm:$0xff] }
  0xd6   : > { %4999 = vmatpush3.msra.mxu1 %v5307_v1  ;;  %4703 = vmatprep.mubr.msk.f32.mxu1 %vm238_vm0, %v6422_v16  ;;  %v6428_v1 = vld [vmem:[#allocation20_spill] sm:$0xff] }
  0xd7   : > { %4927 = vmatprep.mubr.msk.f32.mxu0 %vm238_vm0, %v6423_v17  ;;  %v6437_v16 = vld [vmem:[#allocation12_spill] sm:$0xff] }
  0xd9   : > { %4704 = vmatmul.mubr.msk.f32.gmra.mrb[2].mxu1 %vm238_vm0, %v6424_v18  ;;  %4928 = vmatmul.mubr.msk.f32.gmra.mrb[18].mxu0 %vm238_vm0, %v6425_v19  ;;  %v6438_v18 = vld [vmem:[#allocation25_spill] sm:$0xff] }
  0xda   : > { %4706 = vmatprep.mubr.msk.f32.mxu1 %vm238_vm0, %v6426_v20  ;;  %4930 = vmatprep.mubr.msk.f32.mxu0 %vm238_vm0, %v6427_v21  ;;  %v6439_v20 = vld [vmem:[#allocation13_spill] sm:$0xff] }
  0xdd   : > { %4707 = vmatmul.mubr.msk.f32.gmra.mrb[4].mxu1 %vm238_vm0, %v6428_v1  ;;  %4931 = vmatmul.mubr.msk.f32.gmra.mrb[20].mxu0 %vm238_vm0, %v6429_v22  ;;  %v6061_v1 = vld [vmem:[%s5323_s25 + $0x181] sm:$0xff] }
  0xde   : > { %4709 = vmatprep.mubr.msk.f32.mxu1 %vm238_vm0, %v6430_v23  ;;  %4933 = vmatprep.mubr.msk.f32.mxu0 %vm238_vm0, %v6431_v37  ;;  %v6440_v23 = vld [vmem:[#allocation26_spill] sm:$0xff] }
  0xe1   : > { %4710 = vmatmul.mubr.msk.f32.gmra.mrb[6].mxu1 %vm238_vm0, %v6432_v3  ;;  %4934 = vmatmul.mubr.msk.f32.gmra.mrb[22].mxu0 %vm238_vm0, %v6433_v33  ;;  %v6441_v3 = vld [vmem:[#allocation14_spill] sm:$0xff] }
  0xe2   : > { %4712 = vmatprep.mubr.msk.f32.mxu1 %vm238_vm0, %v6434_v61  ;;  %4936 = vmatprep.mubr.msk.f32.mxu0 %vm238_vm0, %v6435_v12  ;;  %v6442_v61 = vld [vmem:[#allocation28_spill] sm:$0xff] }
  0xe5   : > { %4713 = vmatmul.mubr.msk.f32.gmra.mrb[8].mxu1 %vm238_vm0, %v6436_v14  ;;  %4937 = vmatmul.mubr.msk.f32.gmra.mrb[24].mxu0 %vm238_vm0, %v6437_v16  ;;  %v6072_v14 = vld [vmem:[%s5323_s25 + $0x189] sm:$0xff] }
  0xe6   : > { %4715 = vmatprep.mubr.msk.f32.mxu1 %vm238_vm0, %v6438_v18  ;;  %4939 = vmatprep.mubr.msk.f32.mxu0 %vm238_vm0, %v6439_v20  ;;  %v4147_v18 = vld [vmem:[%s5323_s25 + $0x199] sm:$0xff] }
  0xe9   : > { %4716 = vmatmul.mubr.msk.f32.gmra.mrb[10].mxu1 %vm238_vm0, %v6440_v23  ;;  %4940 = vmatmul.mubr.msk.f32.gmra.mrb[26].mxu0 %vm238_vm0, %v6441_v3  ;;  %v4148_v23 = vld [vmem:[%s5323_s25 + $0x1a1] sm:$0xff]  ;;  %v6444_v3 = vld [vmem:[#allocation32_spill] sm:$0xff] }
  0xea   : > { %4718 = vmatprep.mubr.msk.f32.mxu1 %vm238_vm0, %v6442_v61  ;;  %4942 = vmatprep.mubr.msk.f32.mxu0 %vm238_vm0, %v6061_v1 }
  0xed   : > { %4719 = vmatmul.mubr.msk.f32.gmra.mrb[12].mxu1 %vm238_vm0, %v6443_v8  ;;  %4943 = vmatmul.mubr.msk.f32.gmra.mrb[28].mxu0 %vm238_vm0, %v6072_v14 }
  0xee   : > { %4721 = vmatprep.mubr.msk.f32.mxu1 %vm238_vm0, %v5756_v59  ;;  %4945 = vmatprep.mubr.msk.f32.mxu0 %vm238_vm0, %v4147_v18 }
  0xf1   : > { %4722 = vmatmul.mubr.msk.f32.gmra.mrb[14].mxu1 %vm238_vm0, %v6444_v3  ;;  %4946 = vmatmul.mubr.msk.f32.gmra.mrb[30].mxu0 %vm238_vm0, %v4148_v23 }
  0xf2   : > { %4724 = vmatprep.mubr.msk.f32.mxu1 %vm238_vm0, %v5770_v29  ;;  %4950 = vmatprep.mubr.msk.f32.mxu0 %vm238_vm0, %v5452_v27  ;;  %v6446_v27 = vld [vmem:[#allocation29_spill] sm:$0xff] }
  0xf3   : > { %v4212_v29 = vld [vmem:[%s5323_s25 + $0x19a] sm:$0xff] }
  0xf5   : > { %4725 = vmatmul.mubr.msk.f32.gmra.mrb[16].mxu1 %vm238_vm0, %v5785_v31  ;;  %4951 = vmatmul.mubr.msk.f32.vlgmr.msra.gmra.mrb[0].mxu0 %vm238_vm0, %v5469_v30  ;;  %v6447_v30 = vld [vmem:[#allocation14_spill] sm:$0xff]  ;;  %v6448_v31 = vld [vmem:[#allocation31_spill] sm:$0xff] }
  0xf6   : > { %4727 = vmatprep.mubr.msk.f32.mxu1 %vm238_vm0, %v5790_v0  ;;  %4953 = vmatprep.mubr.msk.f32.mxu0 %vm238_vm0, %v5477_v32  ;;  %v4213_v32 = vld [vmem:[%s5323_s25 + $0x1a2] sm:$0xff] }
  0xf9   : > { %4728 = vmatmul.mubr.msk.f32.gmra.mrb[18].mxu1 %vm238_vm0, %v5802_v28  ;;  %4954 = vmatmul.mubr.msk.f32.gmra.mrb[2].mxu0 %vm238_vm0, %v5492_v34 }
  0xfa   : > { %4730 = vmatprep.mubr.msk.f32.mxu1 %vm238_vm0, %v5805_v5  ;;  %4956 = vmatprep.mubr.msk.f32.mxu0 %vm238_vm0, %v5498_v36 }
  0xfd   : > { %4731 = vmatmul.mubr.msk.f32.gmra.mrb[20].mxu1 %vm238_vm0, %v5816_v7  ;;  %4957 = vmatmul.mubr.msk.f32.gmra.mrb[4].mxu0 %vm238_vm0, %v5512_v38 }
  0xfe   : > { %4733 = vmatprep.mubr.msk.f32.mxu1 %vm238_vm0, %v5819_v10  ;;  %4959 = vmatprep.mubr.msk.f32.mxu0 %vm238_vm0, %v5518_v40 }
 0x101   : > { %4734 = vmatmul.mubr.msk.f32.gmra.mrb[22].mxu1 %vm238_vm0, %v5830_v57  ;;  %4960 = vmatmul.mubr.msk.f32.gmra.mrb[6].mxu0 %vm238_vm0, %v5532_v42 }
 0x102   : > { %4736 = vmatprep.mubr.msk.f32.mxu1 %vm238_vm0, %v5833_v51  ;;  %4962 = vmatprep.mubr.msk.f32.mxu0 %vm238_vm0, %v5538_v44 }
 0x105   : > { %4737 = vmatmul.mubr.msk.f32.gmra.mrb[24].mxu1 %vm238_vm0, %v5844_v47  ;;  %4963 = vmatmul.mubr.msk.f32.gmra.mrb[8].mxu0 %vm238_vm0, %v5552_v46 }
 0x106   : > { %4739 = vmatprep.mubr.msk.f32.mxu1 %vm238_vm0, %v5847_v43  ;;  %4965 = vmatprep.mubr.msk.f32.mxu0 %vm238_vm0, %v5558_v48 }
 0x109   : > { %4740 = vmatmul.mubr.msk.f32.gmra.mrb[26].mxu1 %vm238_vm0, %v5858_v39  ;;  %4966 = vmatmul.mubr.msk.f32.gmra.mrb[10].mxu0 %vm238_vm0, %v5572_v50 }
 0x10a   : > { %4742 = vmatprep.mubr.msk.f32.mxu1 %vm238_vm0, %v5861_v35  ;;  %4968 = vmatprep.mubr.msk.f32.mxu0 %vm238_vm0, %v5578_v52  ;;  %v6225_v52 = vld [vmem:[%s6338_s2] ss:$0 sm:$0xff] }
 0x10d   : > { %4743 = vmatmul.mubr.msk.f32.gmra.mrb[28].mxu1 %vm238_vm0, %v5872_v62  ;;  %4969 = vmatmul.mubr.msk.f32.gmra.mrb[12].mxu0 %vm238_vm0, %v5592_v54 }
 0x10e   : > { %4745 = vmatprep.mubr.msk.f32.mxu1 %vm238_vm0, %v5925_v24  ;;  %4971 = vmatprep.mubr.msk.f32.mxu0 %vm238_vm0, %v5596_v56 }
 0x111   : > { %4746 = vmatmul.mubr.msk.f32.gmra.mrb[30].mxu1 %vm238_vm0, %v5936_v25  ;;  %4972 = vmatmul.mubr.msk.f32.gmra.mrb[14].mxu0 %vm238_vm0, %v5607_v58 }
 0x112   : > { %4774 = vmatprep.mubr.msk.f32.mxu1 %vm238_vm0, %v5449_v26  ;;  %4974 = vmatprep.mubr.msk.f32.mxu0 %vm238_vm0, %v5613_v60  ;;  %v6445_v26 = vld [vmem:[#allocation27_spill] sm:$0xff] }
 0x115   : > { %4775 = vmatmul.mubr.msk.f32.vlgmr.msra.gmra.mrb[16].mxu1 %vm238_vm0, %v6417_v11  ;;  %4975 = vmatmul.mubr.msk.f32.gmra.mrb[16].mxu0 %vm238_vm0, %v5630_v63 }
 0x116   : > { %4777 = vmatprep.mubr.msk.f32.mxu1 %vm238_vm0, %v6419_v13  ;;  %4977 = vmatprep.mubr.msk.f32.mxu0 %vm238_vm0, %v5638_v2 }
 0x119   : > { %4778 = vmatmul.mubr.msk.f32.gmra.mrb[18].mxu1 %vm238_vm0, %v6421_v15  ;;  %4978 = vmatmul.mubr.msk.f32.gmra.mrb[18].mxu0 %vm238_vm0, %v5653_v4 }
 0x11a   : > { %4780 = vmatprep.mubr.msk.f32.mxu1 %vm238_vm0, %v6423_v17  ;;  %4980 = vmatprep.mubr.msk.f32.mxu0 %vm238_vm0, %v5659_v6 }
 0x11d   : > { %4781 = vmatmul.mubr.msk.f32.gmra.mrb[20].mxu1 %vm238_vm0, %v6425_v19  ;;  %4981 = vmatmul.mubr.msk.f32.gmra.mrb[20].mxu0 %vm238_vm0, %v5673_v9 }
 0x11e   : > { %4783 = vmatprep.mubr.msk.f32.mxu1 %vm238_vm0, %v6427_v21  ;;  %4983 = vmatprep.mubr.msk.f32.mxu0 %vm238_vm0, %v5679_v55 }
 0x121   : > { %4784 = vmatmul.mubr.msk.f32.gmra.mrb[22].mxu1 %vm238_vm0, %v6429_v22  ;;  %4984 = vmatmul.mubr.msk.f32.gmra.mrb[22].mxu0 %vm238_vm0, %v5693_v53 }
 0x122   : > { %4786 = vmatprep.mubr.msk.f32.mxu1 %vm238_vm0, %v6431_v37  ;;  %4986 = vmatprep.mubr.msk.f32.mxu0 %vm238_vm0, %v5699_v49 }
 0x125   : > { %4787 = vmatmul.mubr.msk.f32.gmra.mrb[24].mxu1 %vm238_vm0, %v6433_v33  ;;  %4987 = vmatmul.mubr.msk.f32.gmra.mrb[24].mxu0 %vm238_vm0, %v5713_v45 }
 0x126   : > { %4789 = vmatprep.mubr.msk.f32.mxu1 %vm238_vm0, %v6435_v12  ;;  %4989 = vmatprep.mubr.msk.f32.mxu0 %vm238_vm0, %v5719_v41 }
 0x129   : > { %4790 = vmatmul.mubr.msk.f32.gmra.mrb[26].mxu1 %vm238_vm0, %v6437_v16  ;;  %4990 = vmatmul.mubr.msk.f32.gmra.mrb[26].mxu0 %vm238_vm0, %v6445_v26 }
 0x12a   : > { %4792 = vmatprep.mubr.msk.f32.mxu1 %vm238_vm0, %v6439_v20  ;;  %4992 = vmatprep.mubr.msk.f32.mxu0 %vm238_vm0, %v6446_v27 }
 0x12d   : > { %4793 = vmatmul.mubr.msk.f32.gmra.mrb[28].mxu1 %vm238_vm0, %v6447_v30  ;;  %4993 = vmatmul.mubr.msk.f32.gmra.mrb[28].mxu0 %vm238_vm0, %v6448_v31 }
 0x12e   : > { %4795 = vmatprep.mubr.msk.f32.mxu1 %vm238_vm0, %v6061_v1  ;;  %4995 = vmatprep.mubr.msk.f32.mxu0 %vm238_vm0, %v4212_v29 }
 0x131   : > { %4796 = vmatmul.mubr.msk.f32.gmra.mrb[30].mxu1 %vm238_vm0, %v6072_v14  ;;  %4996 = vmatmul.mubr.msk.f32.gmra.mrb[30].mxu0 %vm238_vm0, %v4213_v32 }
 0x1a8   : > { %v4702_v34 = vpop.f32.mrb[0].mxu1 }
 0x1a9   : > { %v1465_v35 = vpop.f32.mrb[1].mxu1 }
 0x1ac   : > { %v4705_v36 = vpop.f32.mrb[2].mxu1 }
 0x1ad   : > { %v1475_v38 = vpop.f32.mrb[3].mxu1 }
 0x1b0   : > { %v4708_v39 = vpop.f32.mrb[4].mxu1 }
 0x1b1   : > { %v1485_v40 = vpop.f32.mrb[5].mxu1 }
 0x1b4   : > { %v4711_v41 = vpop.f32.mrb[6].mxu1 }
 0x1b5   : > { %v1495_v42 = vpop.f32.mrb[7].mxu1 }
 0x1b8   : > { %v4714_v43 = vpop.f32.mrb[8].mxu1 }
 0x1b9   : > { %v1505_v44 = vpop.f32.mrb[9].mxu1 }
 0x1bc   : > { %v4717_v45 = vpop.f32.mrb[10].mxu1 }
 0x1bd   : > { %v1515_v46 = vpop.f32.mrb[11].mxu1 }
 0x1c0   : > { %v6214_v47 = vpop.f32.mrb[12].mxu1 }
 0x1c1   : > { %v6216_v48 = vpop.f32.mrb[13].mxu1 }
 0x1c4   : > { %v6218_v49 = vpop.f32.mrb[14].mxu1 }
 0x1c5   : > { %v6220_v50 = vpop.f32.mrb[15].mxu1 }
 0x1c8   : > { %v4952_v51 = vpop.f32.mrb[0].mxu0 }
 0x1c9   : > { %v5000_v53 = vadd.f32 %v4952_v51, %v4702_v34  ;;  %v3401_v54 = vpop.f32.mrb[1].mxu0 }
 0x1ca   : > { %v5001_v56 = vadd.f32 %v3401_v54, %v1465_v35 }
 0x1cb   : > { %v3600_v58 = vadd.f32 %v5000_v53, %v6225_v52 }
 0x1cc   : > { %v3599_v59 = vadd.f32 %v5001_v56, %v6225_v52  ;;  %v4955_v60 = vpop.f32.mrb[2].mxu0 }
 0x1cd   : > { %v3632_v62 = vmax.f32 %v3600_v58, 0.0  ;;  %v5002_v63 = vadd.f32 %v4955_v60, %v4705_v36  ;;  %v3411_v0 = vpop.f32.mrb[3].mxu0 }
 0x1ce   : > { %v3631_v2 = vmax.f32 %v3599_v59, 0.0  ;;  %v5003_v4 = vadd.f32 %v3411_v0, %v1475_v38 }
 0x1cf   : > { %3665 = vst.msk [vmem:[%s6232_s16 + $0x8] sm:$0xff] %vm3663_vm1, %v3632_v62  ;;  %v3602_v5 = vadd.f32 %v5002_v63, %v6225_v52 }
 0x1d0   : > { %3664 = vst.msk [vmem:[%s6232_s16] sm:$0xff] %vm3663_vm1, %v3631_v2  ;;  %v3601_v6 = vadd.f32 %v5003_v4, %v6225_v52  ;;  %v4958_v7 = vpop.f32.mrb[4].mxu0 }
 0x1d1   : > { %v3634_v9 = vmax.f32 %v3602_v5, 0.0  ;;  %v5004_v10 = vadd.f32 %v4958_v7, %v4708_v39  ;;  %v3421_v55 = vpop.f32.mrb[5].mxu0 }
 0x1d2   : > { %v3633_v57 = vmax.f32 %v3601_v6, 0.0  ;;  %v5005_v28 = vadd.f32 %v3421_v55, %v1485_v40 }
 0x1d3   : > { %3667 = vst.msk [vmem:[%s6232_s16 + $0x18] sm:$0xff] %vm3663_vm1, %v3634_v9  ;;  %v3604_v24 = vadd.f32 %v5004_v10, %v6225_v52 }
 0x1d4   : > { %3666 = vst.msk [vmem:[%s6232_s16 + $0x10] sm:$0xff] %vm3663_vm1, %v3633_v57  ;;  %v3603_v25 = vadd.f32 %v5005_v28, %v6225_v52  ;;  %v4961_v8 = vpop.f32.mrb[6].mxu0 }
 0x1d5   : > { %v3636_v11 = vmax.f32 %v3604_v24, 0.0  ;;  %v5006_v13 = vadd.f32 %v4961_v8, %v4711_v41  ;;  %v3431_v15 = vpop.f32.mrb[7].mxu0 }
 0x1d6   : > { %v3635_v17 = vmax.f32 %v3603_v25, 0.0  ;;  %v5007_v19 = vadd.f32 %v3431_v15, %v1495_v42 }
 0x1d7   : > { %3669 = vst.msk [vmem:[%s6232_s16 + $0x28] sm:$0xff] %vm3663_vm1, %v3636_v11  ;;  %v3606_v21 = vadd.f32 %v5006_v13, %v6225_v52 }
 0x1d8   : > { %3668 = vst.msk [vmem:[%s6232_s16 + $0x20] sm:$0xff] %vm3663_vm1, %v3635_v17  ;;  %v3605_v22 = vadd.f32 %v5007_v19, %v6225_v52  ;;  %v4964_v37 = vpop.f32.mrb[8].mxu0 }
 0x1d9   : > { %v3638_v33 = vmax.f32 %v3606_v21, 0.0  ;;  %v5008_v12 = vadd.f32 %v4964_v37, %v4714_v43  ;;  %v3441_v16 = vpop.f32.mrb[9].mxu0 }
 0x1da   : > { %v3637_v20 = vmax.f32 %v3605_v22, 0.0  ;;  %v5009_v1 = vadd.f32 %v3441_v16, %v1505_v44 }
 0x1db   : > { %3671 = vst.msk [vmem:[%s6232_s16 + $0x38] sm:$0xff] %vm3663_vm1, %v3638_v33  ;;  %v3608_v3 = vadd.f32 %v5008_v12, %v6225_v52 }
 0x1dc   : > { %3670 = vst.msk [vmem:[%s6232_s16 + $0x30] sm:$0xff] %vm3663_vm1, %v3637_v20  ;;  %v3607_v61 = vadd.f32 %v5009_v1, %v6225_v52  ;;  %v4967_v14 = vpop.f32.mrb[10].mxu0 }
 0x1dd   : > { %v3640_v18 = vmax.f32 %v3608_v3, 0.0  ;;  %v5010_v23 = vadd.f32 %v4967_v14, %v4717_v45  ;;  %v3451_v26 = vpop.f32.mrb[11].mxu0 }
 0x1de   : > { %v3639_v27 = vmax.f32 %v3607_v61, 0.0  ;;  %v5011_v29 = vadd.f32 %v3451_v26, %v1515_v46 }
 0x1df   : > { %3673 = vst.msk [vmem:[%s6232_s16 + $0x48] sm:$0xff] %vm3663_vm1, %v3640_v18  ;;  %v3610_v30 = vadd.f32 %v5010_v23, %v6225_v52 }
 0x1e0   : > { %3672 = vst.msk [vmem:[%s6232_s16 + $0x40] sm:$0xff] %vm3663_vm1, %v3639_v27  ;;  %v3609_v31 = vadd.f32 %v5011_v29, %v6225_v52  ;;  %v4970_v32 = vpop.f32.mrb[12].mxu0 }
 0x1e1   : > { %v3642_v34 = vmax.f32 %v3610_v30, 0.0  ;;  %v5012_v35 = vadd.f32 %v4970_v32, %v6214_v47  ;;  %v3461_v36 = vpop.f32.mrb[13].mxu0 }
 0x1e2   : > { %v3641_v38 = vmax.f32 %v3609_v31, 0.0  ;;  %v5013_v39 = vadd.f32 %v3461_v36, %v6216_v48 }
 0x1e3   : > { %3675 = vst.msk [vmem:[%s6232_s16 + $0x58] sm:$0xff] %vm3663_vm1, %v3642_v34  ;;  %v3612_v40 = vadd.f32 %v5012_v35, %v6225_v52 }
 0x1e4   : > { %3674 = vst.msk [vmem:[%s6232_s16 + $0x50] sm:$0xff] %vm3663_vm1, %v3641_v38  ;;  %v3611_v41 = vadd.f32 %v5013_v39, %v6225_v52  ;;  %v4973_v42 = vpop.f32.mrb[14].mxu0 }
 0x1e5   : > { %v3644_v43 = vmax.f32 %v3612_v40, 0.0  ;;  %v5014_v44 = vadd.f32 %v4973_v42, %v6218_v49  ;;  %v3471_v45 = vpop.f32.mrb[15].mxu0 }
 0x1e6   : > { %v3643_v46 = vmax.f32 %v3611_v41, 0.0  ;;  %v5015_v47 = vadd.f32 %v3471_v45, %v6220_v50 }
 0x1e7   : > { %3677 = vst.msk [vmem:[%s6232_s16 + $0x68] sm:$0xff] %vm3663_vm1, %v3644_v43  ;;  %v3614_v48 = vadd.f32 %v5014_v44, %v6225_v52 }
 0x1e8   : > { %3676 = vst.msk [vmem:[%s6232_s16 + $0x60] sm:$0xff] %vm3663_vm1, %v3643_v46  ;;  %v3613_v51 = vadd.f32 %v5015_v47, %v6225_v52  ;;  %v4776_v53 = vpop.f32.mrb[16].mxu1  ;;  %v4976_v54 = vpop.f32.mrb[16].mxu0 }
 0x1e9   : > { %v3646_v56 = vmax.f32 %v3614_v48, 0.0  ;;  %v5016_v58 = vadd.f32 %v4976_v54, %v4776_v53  ;;  %v1932_v59 = vpop.f32.mrb[17].mxu1  ;;  %v3481_v49 = vpop.f32.mrb[17].mxu0 }
 0x1ea   : > { %v3645_v60 = vmax.f32 %v3613_v51, 0.0  ;;  %v5017_v62 = vadd.f32 %v3481_v49, %v1932_v59 }
 0x1eb   : > { %3679 = vst.msk [vmem:[%s6232_s16 + $0x78] sm:$0xff] %vm3663_vm1, %v3646_v56  ;;  %v3616_v50 = vadd.f32 %v5016_v58, %v6225_v52 }
 0x1ec   : > { %3678 = vst.msk [vmem:[%s6232_s16 + $0x70] sm:$0xff] %vm3663_vm1, %v3645_v60  ;;  %v3615_v63 = vadd.f32 %v5017_v62, %v6225_v52  ;;  %v4779_v0 = vpop.f32.mrb[18].mxu1  ;;  %v4979_v2 = vpop.f32.mrb[18].mxu0 }
 0x1ed   : > { %v3648_v4 = vmax.f32 %v3616_v50, 0.0  ;;  %v5018_v5 = vadd.f32 %v4979_v2, %v4779_v0  ;;  %v1942_v6 = vpop.f32.mrb[19].mxu1  ;;  %v3491_v7 = vpop.f32.mrb[19].mxu0 }
 0x1ee   : > { %v3647_v9 = vmax.f32 %v3615_v63, 0.0  ;;  %v5019_v10 = vadd.f32 %v3491_v7, %v1942_v6 }
 0x1ef   : > { %3681 = vst.msk [vmem:[%s6232_s16 + $0x88] sm:$0xff] %vm3663_vm1, %v3648_v4  ;;  %v3618_v55 = vadd.f32 %v5018_v5, %v6225_v52 }
 0x1f0   : > { %3680 = vst.msk [vmem:[%s6232_s16 + $0x80] sm:$0xff] %vm3663_vm1, %v3647_v9  ;;  %v3617_v57 = vadd.f32 %v5019_v10, %v6225_v52  ;;  %v4782_v28 = vpop.f32.mrb[20].mxu1  ;;  %v4982_v24 = vpop.f32.mrb[20].mxu0 }
 0x1f1   : > { %v3650_v25 = vmax.f32 %v3618_v55, 0.0  ;;  %v5020_v8 = vadd.f32 %v4982_v24, %v4782_v28  ;;  %v1952_v11 = vpop.f32.mrb[21].mxu1  ;;  %v3501_v13 = vpop.f32.mrb[21].mxu0 }
 0x1f2   : > { %v3649_v15 = vmax.f32 %v3617_v57, 0.0  ;;  %v5021_v17 = vadd.f32 %v3501_v13, %v1952_v11 }
 0x1f3   : > { %3683 = vst.msk [vmem:[%s6232_s16 + $0x98] sm:$0xff] %vm3663_vm1, %v3650_v25  ;;  %v3620_v19 = vadd.f32 %v5020_v8, %v6225_v52 }
 0x1f4   : > { %3682 = vst.msk [vmem:[%s6232_s16 + $0x90] sm:$0xff] %vm3663_vm1, %v3649_v15  ;;  %v3619_v21 = vadd.f32 %v5021_v17, %v6225_v52  ;;  %v4785_v22 = vpop.f32.mrb[22].mxu1  ;;  %v4985_v37 = vpop.f32.mrb[22].mxu0 }
 0x1f5   : > { %v3652_v33 = vmax.f32 %v3620_v19, 0.0  ;;  %v5022_v12 = vadd.f32 %v4985_v37, %v4785_v22  ;;  %v1962_v16 = vpop.f32.mrb[23].mxu1  ;;  %v3511_v20 = vpop.f32.mrb[23].mxu0 }
 0x1f6   : > { %v3651_v1 = vmax.f32 %v3619_v21, 0.0  ;;  %v5023_v3 = vadd.f32 %v3511_v20, %v1962_v16 }
 0x1f7   : > { %3685 = vst.msk [vmem:[%s6232_s16 + $0xa8] sm:$0xff] %vm3663_vm1, %v3652_v33  ;;  %v3622_v61 = vadd.f32 %v5022_v12, %v6225_v52 }
 0x1f8   : > { %3684 = vst.msk [vmem:[%s6232_s16 + $0xa0] sm:$0xff] %vm3663_vm1, %v3651_v1  ;;  %v3621_v14 = vadd.f32 %v5023_v3, %v6225_v52  ;;  %v4788_v18 = vpop.f32.mrb[24].mxu1  ;;  %v4988_v23 = vpop.f32.mrb[24].mxu0 }
 0x1f9   : > { %v3654_v26 = vmax.f32 %v3622_v61, 0.0  ;;  %v5024_v27 = vadd.f32 %v4988_v23, %v4788_v18  ;;  %v1972_v29 = vpop.f32.mrb[25].mxu1  ;;  %v3521_v30 = vpop.f32.mrb[25].mxu0 }
 0x1fa   : > { %v3653_v31 = vmax.f32 %v3621_v14, 0.0  ;;  %v5025_v32 = vadd.f32 %v3521_v30, %v1972_v29 }
 0x1fb   : > { %3687 = vst.msk [vmem:[%s6232_s16 + $0xb8] sm:$0xff] %vm3663_vm1, %v3654_v26  ;;  %v3624_v34 = vadd.f32 %v5024_v27, %v6225_v52 }
 0x1fc   : > { %3686 = vst.msk [vmem:[%s6232_s16 + $0xb0] sm:$0xff] %vm3663_vm1, %v3653_v31  ;;  %v3623_v35 = vadd.f32 %v5025_v32, %v6225_v52  ;;  %v4791_v36 = vpop.f32.mrb[26].mxu1  ;;  %v4991_v38 = vpop.f32.mrb[26].mxu0 }
 0x1fd   : > { %v3656_v39 = vmax.f32 %v3624_v34, 0.0  ;;  %v5026_v40 = vadd.f32 %v4991_v38, %v4791_v36  ;;  %v1982_v41 = vpop.f32.mrb[27].mxu1  ;;  %v3531_v42 = vpop.f32.mrb[27].mxu0 }
 0x1fe   : > { %v3655_v43 = vmax.f32 %v3623_v35, 0.0  ;;  %v5027_v44 = vadd.f32 %v3531_v42, %v1982_v41 }
 0x1ff   : > { %3689 = vst.msk [vmem:[%s6232_s16 + $0xc8] sm:$0xff] %vm3663_vm1, %v3656_v39  ;;  %v3626_v45 = vadd.f32 %v5026_v40, %v6225_v52 }
 0x200   : > { %3688 = vst.msk [vmem:[%s6232_s16 + $0xc0] sm:$0xff] %vm3663_vm1, %v3655_v43  ;;  %v3625_v46 = vadd.f32 %v5027_v44, %v6225_v52  ;;  %v4794_v47 = vpop.f32.mrb[28].mxu1  ;;  %v4994_v48 = vpop.f32.mrb[28].mxu0 }
 0x201   : > { %v3658_v51 = vmax.f32 %v3626_v45, 0.0  ;;  %v5028_v53 = vadd.f32 %v4994_v48, %v4794_v47  ;;  %v1992_v54 = vpop.f32.mrb[29].mxu1  ;;  %v3541_v56 = vpop.f32.mrb[29].mxu0 }
 0x202   : > { %v3657_v58 = vmax.f32 %v3625_v46, 0.0  ;;  %v5029_v59 = vadd.f32 %v3541_v56, %v1992_v54 }
 0x203   : > { %3691 = vst.msk [vmem:[%s6232_s16 + $0xd8] sm:$0xff] %vm3663_vm1, %v3658_v51  ;;  %v3628_v49 = vadd.f32 %v5028_v53, %v6225_v52 }
 0x204   : > { %3690 = vst.msk [vmem:[%s6232_s16 + $0xd0] sm:$0xff] %vm3663_vm1, %v3657_v58  ;;  %v3627_v60 = vadd.f32 %v5029_v59, %v6225_v52  ;;  %v4797_v62 = vpop.f32.mrb[30].mxu1  ;;  %v4997_v50 = vpop.f32.mrb[30].mxu0 }
 0x205   : > { %v3660_v63 = vmax.f32 %v3628_v49, 0.0  ;;  %v5030_v0 = vadd.f32 %v4997_v50, %v4797_v62  ;;  %v2002_v2 = vpop.f32.mrb[31].mxu1  ;;  %v3551_v4 = vpop.f32.mrb[31].mxu0 }
 0x206   : > { %v3659_v5 = vmax.f32 %v3627_v60, 0.0  ;;  %v5031_v6 = vadd.f32 %v3551_v4, %v2002_v2 }
 0x207   : > { %3693 = vst.msk [vmem:[%s6232_s16 + $0xe8] sm:$0xff] %vm3663_vm1, %v3660_v63  ;;  %v3630_v7 = vadd.f32 %v5030_v0, %v6225_v52 }
 0x208   : > { %3692 = vst.msk [vmem:[%s6232_s16 + $0xe0] sm:$0xff] %vm3663_vm1, %v3659_v5  ;;  %v3629_v9 = vadd.f32 %v5031_v6, %v6225_v52 }
 0x209   : > { %v3662_v10 = vmax.f32 %v3630_v7, 0.0 }
 0x20a   : > { %v3661_v55 = vmax.f32 %v3629_v9, 0.0 }
 0x20b   : > { %3695 = vst.msk [vmem:[%s6232_s16 + $0xf8] sm:$0xff] %vm3663_vm1, %v3662_v10 }
 0x20c   : > { %3694 = vst.msk [vmem:[%s6232_s16 + $0xf0] sm:$0xff] %vm3663_vm1, %v3661_v55 }
 0x20d PF: > { %s13_s12 = sadd.s32 1, %s5271_s12  }
 0x20e   : > { %p10_p4 = scmp.ge.s32.totalorder %s13_s12, 4  }
 0x210   :  { %12 = sbr.rel (!%p10_p4) target bundleno = 1 (0x1), region = 72 }

</bundles_post_ra>
